<compile_context>
chip_gen: v6e
topology: v6e:2x2x1
jax: 0.10.0
libtpu: 0.0.40
codegen_flags: <defaults>
</compile_context>

<pallas_src>
import functools
import math

import jax
import jax.numpy as jnp
from jax.experimental import pallas as pl
from jax.experimental.pallas import tpu as pltpu

NEG_INF = -1e9
LN_EPS = 1e-5                      # torch LayerNorm default eps


def _vmem_limit_bytes():
    """Per-generation scoped-VMEM budget: raise on v5e/v6e (128 MiB), cap on v7x (64 MiB)."""
    try:
        cap = pltpu.get_tpu_info().vmem_capacity_bytes
        if cap >= 100 * 1024 * 1024:        # v5e / v6e
            return 96 * 1024 * 1024
        return 48 * 1024 * 1024             # v7x: leave Mosaic scratch headroom
    except Exception:
        return 48 * 1024 * 1024             # conservative fallback, valid everywhere


VMEM_LIMIT_BYTES = _vmem_limit_bytes()


def _invariant_spec(shape):
    """BlockSpec for a grid-invariant operand (weights / biases / LN params).

    Requests single buffering so Pallas does not allocate a useless second VMEM copy of
    large weight tiles (matters for big E/FF on v7x).  Falls back to the default spec if
    this build does not accept pipeline_mode."""
    idx = lambda *_: (0,) * len(shape)
    try:
        return pl.BlockSpec(shape, idx, pipeline_mode=pl.Buffered(1))
    except Exception:
        return pl.BlockSpec(shape, idx)


def _choose_q_tile(T, max_tile=256):
    """Largest q-row tile (multiple of 8) that exactly divides T, capped at max_tile.

    Exact division keeps the in-kernel pl.ds() query slice in bounds; small T -> no tiling."""
    if T <= max_tile:
        return T
    for t in range(max_tile - (max_tile % 8), 7, -8):
        if T % t == 0:
            return t
    return T                                    # no clean divisor -> un-tiled queries


def _layernorm_f32(y, gamma, beta):
    mu = jnp.mean(y, axis=-1, keepdims=True)
    var = jnp.mean((y - mu) ** 2, axis=-1, keepdims=True)
    return (y - mu) * jax.lax.rsqrt(var + LN_EPS) * gamma + beta


# ----------------------------------------------------------------------------
# Kernels
# ----------------------------------------------------------------------------

def _mha_block_kernel(*refs, num_heads, head_dim, scale, q_tile, is_self):
    """Fused (post-norm) attention block for one (batch, q-tile) grid step.

    self-attn refs : x(1,T,E) bf16, amask(tq,T) f32, kpm(1,1,T) f32, 8 weight/LN refs,
                     out(1,tq,E) bf16, kv scratch (2,S,E) bf16
    cross-attn refs: x(1,tq,E) bf16, memory(1,S,E) bf16, kpm(1,1,S) f32, 8 weight/LN refs,
                     out(1,tq,E) bf16, kv scratch (2,S,E) bf16
    """
    if is_self:
        (x_ref, amask_ref, kpm_ref,
         wq_ref, bq_ref, wkv_ref, bkv_ref, wo_ref, bo_ref,
         g_ref, beta_ref, o_ref, kv_sc) = refs
        kv_src_ref = x_ref                       # x passed once; also the K/V source
    else:
        (x_ref, kv_src_ref, kpm_ref,
         wq_ref, bq_ref, wkv_ref, bkv_ref, wo_ref, bo_ref,
         g_ref, beta_ref, o_ref, kv_sc) = refs
        amask_ref = None

    qi = pl.program_id(1)
    E = wq_ref.shape[0]

    # ---- K/V projection for all heads, ONCE per batch element (hoisted off q-tiles) ----
    @pl.when(qi == 0)
    def _():
        src = kv_src_ref[0]                                                # (S, E) bf16
        kv = jnp.dot(src, wkv_ref[...],
                     preferred_element_type=jnp.float32) + bkv_ref[...]    # (S, 2E) f32
        kv_sc[0] = kv[:, :E].astype(jnp.bfloat16)                          # K
        kv_sc[1] = kv[:, E:].astype(jnp.bfloat16)                          # V

    # ---- Q tile: all heads in one full-width MXU matmul ----
    if is_self:
        q0 = pl.multiple_of(qi * q_tile, q_tile)
        xq = x_ref[0, pl.ds(q0, q_tile), :]                                # (tq, E) bf16
    else:
        xq = x_ref[0]                                                      # (tq, E) bf16

    q_all = (jnp.dot(xq, wq_ref[...], preferred_element_type=jnp.float32)
             + bq_ref[...]) * scale                                        # (tq, E) f32
    qb = q_all.astype(jnp.bfloat16)
    k_all = kv_sc[0]                                                       # (S, E) bf16
    v_all = kv_sc[1]                                                       # (S, E) bf16

    # ---- additive mask combined in-kernel (no (B,T,S) tensor ever hits HBM) ----
    kpm = kpm_ref[0]                                                       # (1, S) f32
    mask = amask_ref[...] + kpm if is_self else kpm                        # (tq|1, S) f32

    # ---- per-head scores/softmax/context; heads land in contiguous Dh lane slices ----
    # TODO(synk): for large H (>=8) replace this static unroll with a batched dot_general
    # or lax.fori_loop to keep vreg pressure flat (H=4 here, unroll is fine).
    ctx_parts = []
    for h in range(num_heads):
        sl = slice(h * head_dim, (h + 1) * head_dim)
        s = jax.lax.dot_general(qb[:, sl], k_all[:, sl],
                                (((1,), (1,)), ((), ())),
                                preferred_element_type=jnp.float32)        # (tq, S)
        s = s + mask
        s = s - jnp.max(s, axis=-1, keepdims=True)
        p = jnp.exp(s)
        p = p * pl.reciprocal(jnp.sum(p, axis=-1, keepdims=True), approx=True)
        ctx_parts.append(
            jnp.dot(p.astype(jnp.bfloat16), v_all[:, sl],
                    preferred_element_type=jnp.float32).astype(jnp.bfloat16))
    ctx = jnp.concatenate(ctx_parts, axis=-1)                              # (tq, E) bf16

    # ---- single out-projection matmul (K=E) + residual + post-norm LayerNorm ----
    attn = jnp.dot(ctx, wo_ref[...], preferred_element_type=jnp.float32) + bo_ref[...]
    y = xq.astype(jnp.float32) + attn
    o_ref[0] = _layernorm_f32(y, g_ref[...], beta_ref[...]).astype(o_ref.dtype)


def _ffn_block_kernel(x_ref, w1_ref, b1_ref, w2_ref, b2_ref, g_ref, beta_ref, o_ref):
    """Fused feed-forward block: LayerNorm(x + W2 @ relu(W1 @ x + b1) + b2)."""
    x = x_ref[...]                                                         # (tm, E) bf16
    h = jnp.dot(x, w1_ref[...], preferred_element_type=jnp.float32) + b1_ref[...]
    h = jnp.maximum(h, 0.0)
    ff = jnp.dot(h.astype(jnp.bfloat16), w2_ref[...],
                 preferred_element_type=jnp.float32) + b2_ref[...]         # (tm, E) f32
    y = x.astype(jnp.float32) + ff
    o_ref[...] = _layernorm_f32(y, g_ref[...], beta_ref[...]).astype(o_ref.dtype)


# ----------------------------------------------------------------------------
# pallas_call wrappers
# ----------------------------------------------------------------------------

def mha_block(x, kv_src, attn_mask, kpm_add, p, gamma, beta, *, num_heads, is_self):
    """x: (B,T,E) bf16; kv_src: (B,S,E) bf16 (cross only); attn_mask: (T,T) f32 (self only);
    kpm_add: (B,1,S) additive f32 key-padding rows.  Returns LayerNorm(x + MHA(...)) in bf16."""
    B, T, E = x.shape
    S = T if is_self else kv_src.shape[1]
    Dh = E // num_heads
    scale = 1.0 / math.sqrt(Dh)
    tq = _choose_q_tile(T)
    nq = T // tq

    weight_specs = [
        _invariant_spec((E, E)),          # wq
        _invariant_spec((1, E)),          # bq
        _invariant_spec((E, 2 * E)),      # wkv (fused K|V)
        _invariant_spec((1, 2 * E)),      # bkv
        _invariant_spec((E, E)),          # wo
        _invariant_spec((1, E)),          # bo
        _invariant_spec((1, E)),          # ln gamma
        _invariant_spec((1, E)),          # ln beta
    ]

    if is_self:
        in_specs = [
            pl.BlockSpec((1, T, E), lambda b, qi: (b, 0, 0)),     # x: Q source + K/V source
            pl.BlockSpec((tq, T), lambda b, qi: (qi, 0)),         # (T,T) attn mask, q-tiled
            pl.BlockSpec((1, 1, T), lambda b, qi: (b, 0, 0)),     # key-padding additive row
        ] + weight_specs
        args = (x, attn_mask, kpm_add)
    else:
        in_specs = [
            pl.BlockSpec((1, tq, E), lambda b, qi: (b, qi, 0)),   # x: Q / residual tile
            pl.BlockSpec((1, S, E), lambda b, qi: (b, 0, 0)),     # memory: K/V source
            pl.BlockSpec((1, 1, S), lambda b, qi: (b, 0, 0)),     # key-padding additive row
        ] + weight_specs
        args = (x, kv_src, kpm_add)

    kernel = functools.partial(_mha_block_kernel, num_heads=num_heads, head_dim=Dh,
                               scale=scale, q_tile=tq, is_self=is_self)

    return pl.pallas_call(
        kernel,
        out_shape=jax.ShapeDtypeStruct((B, T, E), jnp.bfloat16),
        grid=(B, nq),
        in_specs=in_specs,
        out_specs=pl.BlockSpec((1, tq, E), lambda b, qi: (b, qi, 0)),
        scratch_shapes=[pltpu.VMEM((2, S, E), jnp.bfloat16)],      # K/V persist across q-tiles
        compiler_params=pltpu.CompilerParams(
            dimension_semantics=("parallel", "arbitrary"),
            vmem_limit_bytes=VMEM_LIMIT_BYTES),
    )(*args, p["wq"], p["bq"], p["wkv"], p["bkv"], p["wo"], p["bo"], gamma, beta)


def ffn_block(x, p, gamma, beta, row_tile=1024):
    """x: (N,E) bf16 flattened rows.  Returns LayerNorm(x + FFN(x)) in bf16."""
    N, E = x.shape
    FF = p["w1"].shape[1]
    tm = N if N <= row_tile else (row_tile // 8) * 8     # sublane dim multiple of 8

    return pl.pallas_call(
        _ffn_block_kernel,
        out_shape=jax.ShapeDtypeStruct((N, E), jnp.bfloat16),
        grid=(pl.cdiv(N, tm),),
        in_specs=[
            pl.BlockSpec((tm, E), lambda i: (i, 0)),
            _invariant_spec((E, FF)),
            _invariant_spec((1, FF)),
            _invariant_spec((FF, E)),
            _invariant_spec((1, E)),
            _invariant_spec((1, E)),
            _invariant_spec((1, E)),
        ],
        out_specs=pl.BlockSpec((tm, E), lambda i: (i, 0)),
        compiler_params=pltpu.CompilerParams(
            dimension_semantics=("parallel",),
            vmem_limit_bytes=VMEM_LIMIT_BYTES),
    )(x, p["w1"], p["b1"], p["w2"], p["b2"], gamma, beta)


# ----------------------------------------------------------------------------
# Decoder (post-norm TransformerDecoderLayer, eval mode)
# ----------------------------------------------------------------------------

def transformer_decoder(tgt, memory, tgt_mask, tgt_key_padding_mask,
                        memory_key_padding_mask, params, *, num_heads):
    # PyTorch seq-first -> batch-major, bf16 activations between fused blocks.
    x = jnp.transpose(tgt, (1, 0, 2)).astype(jnp.bfloat16)            # (B, T, E)
    mem = jnp.transpose(memory, (1, 0, 2)).astype(jnp.bfloat16)       # (B, S, E)
    B, T, E = x.shape

    amask = tgt_mask.astype(jnp.float32)                              # (T, T) additive
    tgt_kpm = jnp.where(tgt_key_padding_mask, NEG_INF, 0.0).astype(jnp.float32)[:, None, :]
    mem_kpm = jnp.where(memory_key_padding_mask, NEG_INF, 0.0).astype(jnp.float32)[:, None, :]

    for lp in params["layers"]:
        x = mha_block(x, None, amask, tgt_kpm, lp["self_attn"], lp["ln1_g"], lp["ln1_b"],
                      num_heads=num_heads, is_self=True)
        x = mha_block(x, mem, None, mem_kpm, lp["cross_attn"], lp["ln2_g"], lp["ln2_b"],
                      num_heads=num_heads, is_self=False)
        x = ffn_block(x.reshape(B * T, E), lp["ff"], lp["ln3_g"], lp["ln3_b"]).reshape(B, T, E)

    # TODO(synk): nn.TransformerDecoder(norm=None) default -> no final LayerNorm.
    return jnp.transpose(x, (1, 0, 2)).astype(jnp.float32)            # back to (T, B, E) f32


# ----------------------------------------------------------------------------
# Deterministic parameter init (layout == transposed torch weights, head-fused)
# ----------------------------------------------------------------------------

def init_params(key, hidden_dim, num_heads, num_layers, dim_feedforward):
    E, FF = hidden_dim, dim_feedforward

    def w(k, shape):
        # Weights stored bf16 (MXU-native on v5e/v6e/v7x); f32 accumulation in-kernel.
        return (jax.random.normal(k, shape, jnp.float32) * 0.02).astype(jnp.bfloat16)

    def attn_params(k):
        kq, kk, kv, ko = jax.random.split(k, 4)
        wk_ = jax.random.normal(kk, (E, E), jnp.float32) * 0.02    # in_proj_weight[E:2E].T
        wv_ = jax.random.normal(kv, (E, E), jnp.float32) * 0.02    # in_proj_weight[2E:3E].T
        return {
            "wq": w(kq, (E, E)),                                   # in_proj_weight[:E].T
            "bq": jnp.zeros((1, E), jnp.float32),
            "wkv": jnp.concatenate([wk_, wv_], axis=1).astype(jnp.bfloat16),   # (E, 2E)
            "bkv": jnp.zeros((1, 2 * E), jnp.float32),
            "wo": w(ko, (E, E)),                                   # out_proj.weight.T
            "bo": jnp.zeros((1, E), jnp.float32),
        }

    layers = []
    for l in range(num_layers):
        ks = jax.random.split(jax.random.fold_in(key, l), 4)
        layers.append({
            "self_attn": attn_params(ks[0]),
            "cross_attn": attn_params(ks[1]),
            "ff": {
                "w1": w(ks[2], (E, FF)), "b1": jnp.zeros((1, FF), jnp.float32),  # linear1.weight.T
                "w2": w(ks[3], (FF, E)), "b2": jnp.zeros((1, E), jnp.float32),   # linear2.weight.T
            },
            "ln1_g": jnp.ones((1, E), jnp.float32), "ln1_b": jnp.zeros((1, E), jnp.float32),
            "ln2_g": jnp.ones((1, E), jnp.float32), "ln2_b": jnp.zeros((1, E), jnp.float32),
            "ln3_g": jnp.ones((1, E), jnp.float32), "ln3_b": jnp.zeros((1, E), jnp.float32),
        })
    return {"layers": layers}


# ----------------------------------------------------------------------------
# Main
# ----------------------------------------------------------------------------

if __name__ == "__main__":
    hidden_dim, num_heads, num_layers, dim_feedforward = 32, 4, 2, 64
    T, S, B = 8, 8, 2

    key = jax.random.PRNGKey(0)
    k_tgt, k_mem, k_par = jax.random.split(key, 3)

    tgt = jax.random.normal(k_tgt, (T, B, hidden_dim), jnp.float32)
    memory = jax.random.normal(k_mem, (S, B, hidden_dim), jnp.float32)

    # causal additive float mask, like generate_square_subsequent_mask
    causal = jnp.triu(jnp.ones((T, T), jnp.bool_), k=1)
    tgt_mask = jnp.where(causal, NEG_INF, 0.0).astype(jnp.float32)

    # key padding masks (True = ignore); last positions padded for batch 1
    tgt_key_padding_mask = jnp.zeros((B, T), jnp.bool_).at[1, -2:].set(True)
    memory_key_padding_mask = jnp.zeros((B, S), jnp.bool_).at[1, -3:].set(True)

    params = init_params(k_par, hidden_dim, num_heads, num_layers, dim_feedforward)

    fwd = jax.jit(transformer_decoder, static_argnames=("num_heads",))
    out = fwd(tgt, memory, tgt_mask, tgt_key_padding_mask,
              memory_key_padding_mask, params, num_heads=num_heads)
    out = jax.block_until_ready(out)
    assert out.shape == (T, B, hidden_dim)
    print("KERNEL_OK")
</pallas_src>

<mosaic_0001>
module attributes {stable_mosaic.version = 11 : i64} {
  func.func @_mha_block_kernel(%arg0: i32, %arg1: i32, %arg2: memref<1x8x32xbf16, #tpu.memory_space<vmem>>, %arg3: memref<1x8x32xbf16, #tpu.memory_space<vmem>>, %arg4: memref<1x1x8xf32, #tpu.memory_space<vmem>>, %arg5: memref<32x32xbf16, #tpu.memory_space<vmem>>, %arg6: memref<1x32xf32, #tpu.memory_space<vmem>>, %arg7: memref<32x64xbf16, #tpu.memory_space<vmem>>, %arg8: memref<1x64xf32, #tpu.memory_space<vmem>>, %arg9: memref<32x32xbf16, #tpu.memory_space<vmem>>, %arg10: memref<1x32xf32, #tpu.memory_space<vmem>>, %arg11: memref<1x32xf32, #tpu.memory_space<vmem>>, %arg12: memref<1x32xf32, #tpu.memory_space<vmem>>, %arg13: memref<1x8x32xbf16, #tpu.memory_space<vmem>>, %arg14: memref<2x8x32xbf16, #tpu.memory_space<vmem>>) attributes {dimension_semantics = [#tpu.dimension_semantics<parallel>, #tpu.dimension_semantics<arbitrary>], iteration_bounds = array<i64: 2, 1>, scalar_prefetch = 0 : i64, scratch_operands = 1 : i64, tpu.core_type = #tpu.core_type<tc>, window_params = [{transform_indices = @transform_0, window_bounds = array<i64: 1, 8, 32>}, {transform_indices = @transform_1, window_bounds = array<i64: 1, 8, 32>}, {transform_indices = @transform_2, window_bounds = array<i64: 1, 1, 8>}, {pipeline_mode = #tpu.pipeline_mode<synchronous>, transform_indices = @transform_3, window_bounds = array<i64: 32, 32>}, {pipeline_mode = #tpu.pipeline_mode<synchronous>, transform_indices = @transform_4, window_bounds = array<i64: 1, 32>}, {pipeline_mode = #tpu.pipeline_mode<synchronous>, transform_indices = @transform_5, window_bounds = array<i64: 32, 64>}, {pipeline_mode = #tpu.pipeline_mode<synchronous>, transform_indices = @transform_6, window_bounds = array<i64: 1, 64>}, {pipeline_mode = #tpu.pipeline_mode<synchronous>, transform_indices = @transform_7, window_bounds = array<i64: 32, 32>}, {pipeline_mode = #tpu.pipeline_mode<synchronous>, transform_indices = @transform_8, window_bounds = array<i64: 1, 32>}, {pipeline_mode = #tpu.pipeline_mode<synchronous>, transform_indices = @transform_9, window_bounds = array<i64: 1, 32>}, {pipeline_mode = #tpu.pipeline_mode<synchronous>, transform_indices = @transform_10, window_bounds = array<i64: 1, 32>}, {transform_indices = @transform_11, window_bounds = array<i64: 1, 8, 32>}]} {
    %c0_i32 = arith.constant 0 : i32
    %0 = arith.cmpi eq, %arg1, %c0_i32 : i32
    %1 = arith.extui %0 : i1 to i32
    %c0_i32_0 = arith.constant 0 : i32
    %2 = arith.cmpi ne, %1, %c0_i32_0 : i32
    scf.if %2 {
      %c0_49 = arith.constant 0 : index
      %c0_50 = arith.constant 0 : index
      %c0_51 = arith.constant 0 : index
      %131 = vector.load %arg3[%c0_49, %c0_50, %c0_51] : memref<1x8x32xbf16, #tpu.memory_space<vmem>>, vector<1x8x32xbf16>
      %132 = vector.shape_cast %131 : vector<1x8x32xbf16> to vector<8x32xbf16>
      %c0_52 = arith.constant 0 : index
      %c0_53 = arith.constant 0 : index
      %133 = vector.load %arg7[%c0_52, %c0_53] : memref<32x64xbf16, #tpu.memory_space<vmem>>, vector<32x64xbf16>
      %cst_54 = arith.constant dense<0.000000e+00> : vector<8x64xf32>
      %134 = tpu.matmul %132, %133, %cst_54 {dimension_numbers = #tpu.dot_dimension_numbers<[1], [0], [0], [1], [0, 0, 1, 1], [], []>} : vector<8x32xbf16>, vector<32x64xbf16>, vector<8x64xf32> -> vector<8x64xf32>
      %c0_55 = arith.constant 0 : index
      %c0_56 = arith.constant 0 : index
      %135 = vector.load %arg8[%c0_55, %c0_56] : memref<1x64xf32, #tpu.memory_space<vmem>>, vector<1x64xf32>
      %136 = vector.broadcast %135 : vector<1x64xf32> to vector<8x64xf32>
      %137 = arith.addf %134, %136 : vector<8x64xf32>
      %138 = vector.extract_strided_slice %137 {offsets = [0, 0], sizes = [8, 32], strides = [1, 1]} : vector<8x64xf32> to vector<8x32xf32>
      %139 = arith.truncf %138 : vector<8x32xf32> to vector<8x32xbf16>
      %c0_57 = arith.constant 0 : index
      %c0_58 = arith.constant 0 : index
      %c0_59 = arith.constant 0 : index
      %140 = vector.load %arg14[%c0_57, %c0_58, %c0_59] : memref<2x8x32xbf16, #tpu.memory_space<vmem>>, vector<1x8x32xbf16>
      %141 = vector.shape_cast %140 : vector<1x8x32xbf16> to vector<8x32xbf16>
      %142 = vector.shape_cast %139 : vector<8x32xbf16> to vector<1x8x32xbf16>
      tpu.vector_store %arg14[%c0_57, %c0_58, %c0_59], %142 {strides = array<i32>} : memref<2x8x32xbf16, #tpu.memory_space<vmem>>, vector<1x8x32xbf16>,
      %143 = vector.extract_strided_slice %137 {offsets = [0, 32], sizes = [8, 32], strides = [1, 1]} : vector<8x64xf32> to vector<8x32xf32>
      %144 = arith.truncf %143 : vector<8x32xf32> to vector<8x32xbf16>
      %c1_60 = arith.constant 1 : index
      %c0_61 = arith.constant 0 : index
      %c0_62 = arith.constant 0 : index
      %145 = vector.load %arg14[%c1_60, %c0_61, %c0_62] : memref<2x8x32xbf16, #tpu.memory_space<vmem>>, vector<1x8x32xbf16>
      %146 = vector.shape_cast %145 : vector<1x8x32xbf16> to vector<8x32xbf16>
      %147 = vector.shape_cast %144 : vector<8x32xbf16> to vector<1x8x32xbf16>
      tpu.vector_store %arg14[%c1_60, %c0_61, %c0_62], %147 {strides = array<i32>} : memref<2x8x32xbf16, #tpu.memory_space<vmem>>, vector<1x8x32xbf16>,
    } else {
    }
    %c0 = arith.constant 0 : index
    %c0_1 = arith.constant 0 : index
    %c0_2 = arith.constant 0 : index
    %3 = vector.load %arg2[%c0, %c0_1, %c0_2] : memref<1x8x32xbf16, #tpu.memory_space<vmem>>, vector<1x8x32xbf16>
    %4 = vector.shape_cast %3 : vector<1x8x32xbf16> to vector<8x32xbf16>
    %c0_3 = arith.constant 0 : index
    %c0_4 = arith.constant 0 : index
    %5 = vector.load %arg5[%c0_3, %c0_4] : memref<32x32xbf16, #tpu.memory_space<vmem>>, vector<32x32xbf16>
    %cst = arith.constant dense<0.000000e+00> : vector<8x32xf32>
    %6 = tpu.matmul %4, %5, %cst {dimension_numbers = #tpu.dot_dimension_numbers<[1], [0], [0], [1], [0, 0, 1, 1], [], []>} : vector<8x32xbf16>, vector<32x32xbf16>, vector<8x32xf32> -> vector<8x32xf32>
    %c0_5 = arith.constant 0 : index
    %c0_6 = arith.constant 0 : index
    %7 = vector.load %arg6[%c0_5, %c0_6] : memref<1x32xf32, #tpu.memory_space<vmem>>, vector<1x32xf32>
    %8 = vector.broadcast %7 : vector<1x32xf32> to vector<8x32xf32>
    %9 = arith.addf %6, %8 : vector<8x32xf32>
    %cst_7 = arith.constant 0.353553385 : f32
    %10 = vector.broadcast %cst_7 : f32 to vector<8x32xf32>
    %11 = arith.mulf %9, %10 : vector<8x32xf32>
    %12 = arith.truncf %11 : vector<8x32xf32> to vector<8x32xbf16>
    %c0_8 = arith.constant 0 : index
    %c0_9 = arith.constant 0 : index
    %c0_10 = arith.constant 0 : index
    %13 = vector.load %arg14[%c0_8, %c0_9, %c0_10] : memref<2x8x32xbf16, #tpu.memory_space<vmem>>, vector<1x8x32xbf16>
    %14 = vector.shape_cast %13 : vector<1x8x32xbf16> to vector<8x32xbf16>
    %c1 = arith.constant 1 : index
    %c0_11 = arith.constant 0 : index
    %c0_12 = arith.constant 0 : index
    %15 = vector.load %arg14[%c1, %c0_11, %c0_12] : memref<2x8x32xbf16, #tpu.memory_space<vmem>>, vector<1x8x32xbf16>
    %16 = vector.shape_cast %15 : vector<1x8x32xbf16> to vector<8x32xbf16>
    %c0_13 = arith.constant 0 : index
    %c0_14 = arith.constant 0 : index
    %c0_15 = arith.constant 0 : index
    %17 = vector.load %arg4[%c0_13, %c0_14, %c0_15] : memref<1x1x8xf32, #tpu.memory_space<vmem>>, vector<1x1x8xf32>
    %18 = vector.shape_cast %17 : vector<1x1x8xf32> to vector<1x8xf32>
    %19 = vector.extract_strided_slice %12 {offsets = [0, 0], sizes = [8, 8], strides = [1, 1]} : vector<8x32xbf16> to vector<8x8xbf16>
    %20 = vector.extract_strided_slice %14 {offsets = [0, 0], sizes = [8, 8], strides = [1, 1]} : vector<8x32xbf16> to vector<8x8xbf16>
    %cst_16 = arith.constant dense<0.000000e+00> : vector<8x8xf32>
    %21 = tpu.matmul %19, %20, %cst_16 {dimension_numbers = #tpu.dot_dimension_numbers<[1], [1], [0], [0], [0, 0, 1, 0], [], []>} : vector<8x8xbf16>, vector<8x8xbf16>, vector<8x8xf32> -> vector<8x8xf32>
    %22 = vector.broadcast %18 : vector<1x8xf32> to vector<8x8xf32>
    %23 = arith.addf %21, %22 : vector<8x8xf32>
    %cst_17 = arith.constant dense<0xFF800000> : vector<8xf32>
    %24 = vector.multi_reduction <maximumf>, %23, %cst_17 [1] : vector<8x8xf32> to vector<8xf32>
    %25 = vector.shape_cast %24 : vector<8xf32> to vector<8x1xf32>
    %26 = vector.broadcast %25 : vector<8x1xf32> to vector<8x8xf32>
    %27 = arith.subf %23, %26 : vector<8x8xf32>
    %28 = math.exp %27 : vector<8x8xf32>
    %cst_18 = arith.constant dense<0.000000e+00> : vector<8xf32>
    %29 = vector.multi_reduction <add>, %28, %cst_18 [1] : vector<8x8xf32> to vector<8xf32>
    %30 = vector.shape_cast %29 : vector<8xf32> to vector<8x1xf32>
    %31 = tpu.reciprocal %30 {approx = true} : vector<8x1xf32> -> vector<8x1xf32>
    %32 = vector.broadcast %31 : vector<8x1xf32> to vector<8x8xf32>
    %33 = arith.mulf %28, %32 : vector<8x8xf32>
    %34 = arith.truncf %33 : vector<8x8xf32> to vector<8x8xbf16>
    %35 = vector.extract_strided_slice %16 {offsets = [0, 0], sizes = [8, 8], strides = [1, 1]} : vector<8x32xbf16> to vector<8x8xbf16>
    %cst_19 = arith.constant dense<0.000000e+00> : vector<8x8xf32>
    %36 = tpu.matmul %34, %35, %cst_19 {dimension_numbers = #tpu.dot_dimension_numbers<[1], [0], [0], [1], [0, 0, 1, 1], [], []>} : vector<8x8xbf16>, vector<8x8xbf16>, vector<8x8xf32> -> vector<8x8xf32>
    %37 = arith.truncf %36 : vector<8x8xf32> to vector<8x8xbf16>
    %38 = vector.extract_strided_slice %12 {offsets = [0, 8], sizes = [8, 8], strides = [1, 1]} : vector<8x32xbf16> to vector<8x8xbf16>
    %39 = vector.extract_strided_slice %14 {offsets = [0, 8], sizes = [8, 8], strides = [1, 1]} : vector<8x32xbf16> to vector<8x8xbf16>
    %cst_20 = arith.constant dense<0.000000e+00> : vector<8x8xf32>
    %40 = tpu.matmul %38, %39, %cst_20 {dimension_numbers = #tpu.dot_dimension_numbers<[1], [1], [0], [0], [0, 0, 1, 0], [], []>} : vector<8x8xbf16>, vector<8x8xbf16>, vector<8x8xf32> -> vector<8x8xf32>
    %41 = vector.broadcast %18 : vector<1x8xf32> to vector<8x8xf32>
    %42 = arith.addf %40, %41 : vector<8x8xf32>
    %cst_21 = arith.constant dense<0xFF800000> : vector<8xf32>
    %43 = vector.multi_reduction <maximumf>, %42, %cst_21 [1] : vector<8x8xf32> to vector<8xf32>
    %44 = vector.shape_cast %43 : vector<8xf32> to vector<8x1xf32>
    %45 = vector.broadcast %44 : vector<8x1xf32> to vector<8x8xf32>
    %46 = arith.subf %42, %45 : vector<8x8xf32>
    %47 = math.exp %46 : vector<8x8xf32>
    %cst_22 = arith.constant dense<0.000000e+00> : vector<8xf32>
    %48 = vector.multi_reduction <add>, %47, %cst_22 [1] : vector<8x8xf32> to vector<8xf32>
    %49 = vector.shape_cast %48 : vector<8xf32> to vector<8x1xf32>
    %50 = tpu.reciprocal %49 {approx = true} : vector<8x1xf32> -> vector<8x1xf32>
    %51 = vector.broadcast %50 : vector<8x1xf32> to vector<8x8xf32>
    %52 = arith.mulf %47, %51 : vector<8x8xf32>
    %53 = arith.truncf %52 : vector<8x8xf32> to vector<8x8xbf16>
    %54 = vector.extract_strided_slice %16 {offsets = [0, 8], sizes = [8, 8], strides = [1, 1]} : vector<8x32xbf16> to vector<8x8xbf16>
    %cst_23 = arith.constant dense<0.000000e+00> : vector<8x8xf32>
    %55 = tpu.matmul %53, %54, %cst_23 {dimension_numbers = #tpu.dot_dimension_numbers<[1], [0], [0], [1], [0, 0, 1, 1], [], []>} : vector<8x8xbf16>, vector<8x8xbf16>, vector<8x8xf32> -> vector<8x8xf32>
    %56 = arith.truncf %55 : vector<8x8xf32> to vector<8x8xbf16>
    %57 = vector.extract_strided_slice %12 {offsets = [0, 16], sizes = [8, 8], strides = [1, 1]} : vector<8x32xbf16> to vector<8x8xbf16>
    %58 = vector.extract_strided_slice %14 {offsets = [0, 16], sizes = [8, 8], strides = [1, 1]} : vector<8x32xbf16> to vector<8x8xbf16>
    %cst_24 = arith.constant dense<0.000000e+00> : vector<8x8xf32>
    %59 = tpu.matmul %57, %58, %cst_24 {dimension_numbers = #tpu.dot_dimension_numbers<[1], [1], [0], [0], [0, 0, 1, 0], [], []>} : vector<8x8xbf16>, vector<8x8xbf16>, vector<8x8xf32> -> vector<8x8xf32>
    %60 = vector.broadcast %18 : vector<1x8xf32> to vector<8x8xf32>
    %61 = arith.addf %59, %60 : vector<8x8xf32>
    %cst_25 = arith.constant dense<0xFF800000> : vector<8xf32>
    %62 = vector.multi_reduction <maximumf>, %61, %cst_25 [1] : vector<8x8xf32> to vector<8xf32>
    %63 = vector.shape_cast %62 : vector<8xf32> to vector<8x1xf32>
    %64 = vector.broadcast %63 : vector<8x1xf32> to vector<8x8xf32>
    %65 = arith.subf %61, %64 : vector<8x8xf32>
    %66 = math.exp %65 : vector<8x8xf32>
    %cst_26 = arith.constant dense<0.000000e+00> : vector<8xf32>
    %67 = vector.multi_reduction <add>, %66, %cst_26 [1] : vector<8x8xf32> to vector<8xf32>
    %68 = vector.shape_cast %67 : vector<8xf32> to vector<8x1xf32>
    %69 = tpu.reciprocal %68 {approx = true} : vector<8x1xf32> -> vector<8x1xf32>
    %70 = vector.broadcast %69 : vector<8x1xf32> to vector<8x8xf32>
    %71 = arith.mulf %66, %70 : vector<8x8xf32>
    %72 = arith.truncf %71 : vector<8x8xf32> to vector<8x8xbf16>
    %73 = vector.extract_strided_slice %16 {offsets = [0, 16], sizes = [8, 8], strides = [1, 1]} : vector<8x32xbf16> to vector<8x8xbf16>
    %cst_27 = arith.constant dense<0.000000e+00> : vector<8x8xf32>
    %74 = tpu.matmul %72, %73, %cst_27 {dimension_numbers = #tpu.dot_dimension_numbers<[1], [0], [0], [1], [0, 0, 1, 1], [], []>} : vector<8x8xbf16>, vector<8x8xbf16>, vector<8x8xf32> -> vector<8x8xf32>
    %75 = arith.truncf %74 : vector<8x8xf32> to vector<8x8xbf16>
    %76 = vector.extract_strided_slice %12 {offsets = [0, 24], sizes = [8, 8], strides = [1, 1]} : vector<8x32xbf16> to vector<8x8xbf16>
    %77 = vector.extract_strided_slice %14 {offsets = [0, 24], sizes = [8, 8], strides = [1, 1]} : vector<8x32xbf16> to vector<8x8xbf16>
    %cst_28 = arith.constant dense<0.000000e+00> : vector<8x8xf32>
    %78 = tpu.matmul %76, %77, %cst_28 {dimension_numbers = #tpu.dot_dimension_numbers<[1], [1], [0], [0], [0, 0, 1, 0], [], []>} : vector<8x8xbf16>, vector<8x8xbf16>, vector<8x8xf32> -> vector<8x8xf32>
    %79 = vector.broadcast %18 : vector<1x8xf32> to vector<8x8xf32>
    %80 = arith.addf %78, %79 : vector<8x8xf32>
    %cst_29 = arith.constant dense<0xFF800000> : vector<8xf32>
    %81 = vector.multi_reduction <maximumf>, %80, %cst_29 [1] : vector<8x8xf32> to vector<8xf32>
    %82 = vector.shape_cast %81 : vector<8xf32> to vector<8x1xf32>
    %83 = vector.broadcast %82 : vector<8x1xf32> to vector<8x8xf32>
    %84 = arith.subf %80, %83 : vector<8x8xf32>
    %85 = math.exp %84 : vector<8x8xf32>
    %cst_30 = arith.constant dense<0.000000e+00> : vector<8xf32>
    %86 = vector.multi_reduction <add>, %85, %cst_30 [1] : vector<8x8xf32> to vector<8xf32>
    %87 = vector.shape_cast %86 : vector<8xf32> to vector<8x1xf32>
    %88 = tpu.reciprocal %87 {approx = true} : vector<8x1xf32> -> vector<8x1xf32>
    %89 = vector.broadcast %88 : vector<8x1xf32> to vector<8x8xf32>
    %90 = arith.mulf %85, %89 : vector<8x8xf32>
    %91 = arith.truncf %90 : vector<8x8xf32> to vector<8x8xbf16>
    %92 = vector.extract_strided_slice %16 {offsets = [0, 24], sizes = [8, 8], strides = [1, 1]} : vector<8x32xbf16> to vector<8x8xbf16>
    %cst_31 = arith.constant dense<0.000000e+00> : vector<8x8xf32>
    %93 = tpu.matmul %91, %92, %cst_31 {dimension_numbers = #tpu.dot_dimension_numbers<[1], [0], [0], [1], [0, 0, 1, 1], [], []>} : vector<8x8xbf16>, vector<8x8xbf16>, vector<8x8xf32> -> vector<8x8xf32>
    %94 = arith.truncf %93 : vector<8x8xf32> to vector<8x8xbf16>
    %95 = tpu.concatenate %37, %56, %75, %94 in 1 : vector<8x8xbf16>, vector<8x8xbf16>, vector<8x8xbf16>, vector<8x8xbf16> -> vector<8x32xbf16>
    %c0_32 = arith.constant 0 : index
    %c0_33 = arith.constant 0 : index
    %96 = vector.load %arg9[%c0_32, %c0_33] : memref<32x32xbf16, #tpu.memory_space<vmem>>, vector<32x32xbf16>
    %cst_34 = arith.constant dense<0.000000e+00> : vector<8x32xf32>
    %97 = tpu.matmul %95, %96, %cst_34 {dimension_numbers = #tpu.dot_dimension_numbers<[1], [0], [0], [1], [0, 0, 1, 1], [], []>} : vector<8x32xbf16>, vector<32x32xbf16>, vector<8x32xf32> -> vector<8x32xf32>
    %c0_35 = arith.constant 0 : index
    %c0_36 = arith.constant 0 : index
    %98 = vector.load %arg10[%c0_35, %c0_36] : memref<1x32xf32, #tpu.memory_space<vmem>>, vector<1x32xf32>
    %99 = vector.broadcast %98 : vector<1x32xf32> to vector<8x32xf32>
    %100 = arith.addf %97, %99 : vector<8x32xf32>
    %101 = arith.extf %4 : vector<8x32xbf16> to vector<8x32xf32>
    %102 = arith.addf %101, %100 : vector<8x32xf32>
    %c0_37 = arith.constant 0 : index
    %c0_38 = arith.constant 0 : index
    %103 = vector.load %arg11[%c0_37, %c0_38] : memref<1x32xf32, #tpu.memory_space<vmem>>, vector<1x32xf32>
    %c0_39 = arith.constant 0 : index
    %c0_40 = arith.constant 0 : index
    %104 = vector.load %arg12[%c0_39, %c0_40] : memref<1x32xf32, #tpu.memory_space<vmem>>, vector<1x32xf32>
    %cst_41 = arith.constant dense<0.000000e+00> : vector<8xf32>
    %105 = vector.multi_reduction <add>, %102, %cst_41 [1] : vector<8x32xf32> to vector<8xf32>
    %106 = vector.shape_cast %105 : vector<8xf32> to vector<8x1xf32>
    %cst_42 = arith.constant 3.200000e+01 : f32
    %107 = vector.broadcast %cst_42 : f32 to vector<8x1xf32>
    %108 = arith.divf %106, %107 : vector<8x1xf32>
    %109 = vector.broadcast %108 : vector<8x1xf32> to vector<8x32xf32>
    %110 = arith.subf %102, %109 : vector<8x32xf32>
    %111 = arith.mulf %110, %110 : vector<8x32xf32>
    %cst_43 = arith.constant dense<0.000000e+00> : vector<8xf32>
    %112 = vector.multi_reduction <add>, %111, %cst_43 [1] : vector<8x32xf32> to vector<8xf32>
    %113 = vector.shape_cast %112 : vector<8xf32> to vector<8x1xf32>
    %cst_44 = arith.constant 3.200000e+01 : f32
    %114 = vector.broadcast %cst_44 : f32 to vector<8x1xf32>
    %115 = arith.divf %113, %114 : vector<8x1xf32>
    %116 = vector.broadcast %108 : vector<8x1xf32> to vector<8x32xf32>
    %117 = arith.subf %102, %116 : vector<8x32xf32>
    %cst_45 = arith.constant 9.99999974E-6 : f32
    %118 = vector.broadcast %cst_45 : f32 to vector<8x1xf32>
    %119 = arith.addf %115, %118 : vector<8x1xf32>
    %120 = math.rsqrt %119 : vector<8x1xf32>
    %121 = vector.broadcast %120 : vector<8x1xf32> to vector<8x32xf32>
    %122 = arith.mulf %117, %121 : vector<8x32xf32>
    %123 = vector.broadcast %103 : vector<1x32xf32> to vector<8x32xf32>
    %124 = arith.mulf %122, %123 : vector<8x32xf32>
    %125 = vector.broadcast %104 : vector<1x32xf32> to vector<8x32xf32>
    %126 = arith.addf %124, %125 : vector<8x32xf32>
    %127 = arith.truncf %126 : vector<8x32xf32> to vector<8x32xbf16>
    %c0_46 = arith.constant 0 : index
    %c0_47 = arith.constant 0 : index
    %c0_48 = arith.constant 0 : index
    %128 = vector.load %arg13[%c0_46, %c0_47, %c0_48] : memref<1x8x32xbf16, #tpu.memory_space<vmem>>, vector<1x8x32xbf16>
    %129 = vector.shape_cast %128 : vector<1x8x32xbf16> to vector<8x32xbf16>
    %130 = vector.shape_cast %127 : vector<8x32xbf16> to vector<1x8x32xbf16>
    tpu.vector_store %arg13[%c0_46, %c0_47, %c0_48], %130 {strides = array<i32>} : memref<1x8x32xbf16, #tpu.memory_space<vmem>>, vector<1x8x32xbf16>,
    return
  }
  func.func @transform_0(%arg0: i32, %arg1: i32) -> (i32, i32, i32) {
    %c0_i32 = arith.constant 0 : i32
    %c0_i32_0 = arith.constant 0 : i32
    return %arg0, %arg1, %c0_i32 : i32, i32, i32
  }
  func.func @transform_1(%arg0: i32, %arg1: i32) -> (i32, i32, i32) {
    %c0_i32 = arith.constant 0 : i32
    %c0_i32_0 = arith.constant 0 : i32
    %c0_i32_1 = arith.constant 0 : i32
    return %arg0, %c0_i32, %c0_i32_0 : i32, i32, i32
  }
  func.func @transform_2(%arg0: i32, %arg1: i32) -> (i32, i32, i32) {
    %c0_i32 = arith.constant 0 : i32
    %c0_i32_0 = arith.constant 0 : i32
    %c0_i32_1 = arith.constant 0 : i32
    return %arg0, %c0_i32, %c0_i32_0 : i32, i32, i32
  }
  func.func @transform_3(%arg0: i32, %arg1: i32) -> (i32, i32) {
    %c0_i32 = arith.constant 0 : i32
    %c0_i32_0 = arith.constant 0 : i32
    %c0_i32_1 = arith.constant 0 : i32
    return %c0_i32, %c0_i32_0 : i32, i32
  }
  func.func @transform_4(%arg0: i32, %arg1: i32) -> (i32, i32) {
    %c0_i32 = arith.constant 0 : i32
    %c0_i32_0 = arith.constant 0 : i32
    %c0_i32_1 = arith.constant 0 : i32
    return %c0_i32, %c0_i32_0 : i32, i32
  }
  func.func @transform_5(%arg0: i32, %arg1: i32) -> (i32, i32) {
    %c0_i32 = arith.constant 0 : i32
    %c0_i32_0 = arith.constant 0 : i32
    %c0_i32_1 = arith.constant 0 : i32
    return %c0_i32, %c0_i32_0 : i32, i32
  }
  func.func @transform_6(%arg0: i32, %arg1: i32) -> (i32, i32) {
    %c0_i32 = arith.constant 0 : i32
    %c0_i32_0 = arith.constant 0 : i32
    %c0_i32_1 = arith.constant 0 : i32
    return %c0_i32, %c0_i32_0 : i32, i32
  }
  func.func @transform_7(%arg0: i32, %arg1: i32) -> (i32, i32) {
    %c0_i32 = arith.constant 0 : i32
    %c0_i32_0 = arith.constant 0 : i32
    %c0_i32_1 = arith.constant 0 : i32
    return %c0_i32, %c0_i32_0 : i32, i32
  }
  func.func @transform_8(%arg0: i32, %arg1: i32) -> (i32, i32) {
    %c0_i32 = arith.constant 0 : i32
    %c0_i32_0 = arith.constant 0 : i32
    %c0_i32_1 = arith.constant 0 : i32
    return %c0_i32, %c0_i32_0 : i32, i32
  }
  func.func @transform_9(%arg0: i32, %arg1: i32) -> (i32, i32) {
    %c0_i32 = arith.constant 0 : i32
    %c0_i32_0 = arith.constant 0 : i32
    %c0_i32_1 = arith.constant 0 : i32
    return %c0_i32, %c0_i32_0 : i32, i32
  }
  func.func @transform_10(%arg0: i32, %arg1: i32) -> (i32, i32) {
    %c0_i32 = arith.constant 0 : i32
    %c0_i32_0 = arith.constant 0 : i32
    %c0_i32_1 = arith.constant 0 : i32
    return %c0_i32, %c0_i32_0 : i32, i32
  }
  func.func @transform_11(%arg0: i32, %arg1: i32) -> (i32, i32, i32) {
    %c0_i32 = arith.constant 0 : i32
    %c0_i32_0 = arith.constant 0 : i32
    return %arg0, %arg1, %c0_i32 : i32, i32, i32
  }
}

module attributes {stable_mosaic.version = 11 : i64} {
  func.func @_mha_block_kernel(%arg0: i32, %arg1: i32, %arg2: memref<1x8x32xbf16, #tpu.memory_space<vmem>>, %arg3: memref<8x8xf32, #tpu.memory_space<vmem>>, %arg4: memref<1x1x8xf32, #tpu.memory_space<vmem>>, %arg5: memref<32x32xbf16, #tpu.memory_space<vmem>>, %arg6: memref<1x32xf32, #tpu.memory_space<vmem>>, %arg7: memref<32x64xbf16, #tpu.memory_space<vmem>>, %arg8: memref<1x64xf32, #tpu.memory_space<vmem>>, %arg9: memref<32x32xbf16, #tpu.memory_space<vmem>>, %arg10: memref<1x32xf32, #tpu.memory_space<vmem>>, %arg11: memref<1x32xf32, #tpu.memory_space<vmem>>, %arg12: memref<1x32xf32, #tpu.memory_space<vmem>>, %arg13: memref<1x8x32xbf16, #tpu.memory_space<vmem>>, %arg14: memref<2x8x32xbf16, #tpu.memory_space<vmem>>) attributes {dimension_semantics = [#tpu.dimension_semantics<parallel>, #tpu.dimension_semantics<arbitrary>], iteration_bounds = array<i64: 2, 1>, scalar_prefetch = 0 : i64, scratch_operands = 1 : i64, tpu.core_type = #tpu.core_type<tc>, window_params = [{transform_indices = @transform_0, window_bounds = array<i64: 1, 8, 32>}, {transform_indices = @transform_1, window_bounds = array<i64: 8, 8>}, {transform_indices = @transform_2, window_bounds = array<i64: 1, 1, 8>}, {pipeline_mode = #tpu.pipeline_mode<synchronous>, transform_indices = @transform_3, window_bounds = array<i64: 32, 32>}, {pipeline_mode = #tpu.pipeline_mode<synchronous>, transform_indices = @transform_4, window_bounds = array<i64: 1, 32>}, {pipeline_mode = #tpu.pipeline_mode<synchronous>, transform_indices = @transform_5, window_bounds = array<i64: 32, 64>}, {pipeline_mode = #tpu.pipeline_mode<synchronous>, transform_indices = @transform_6, window_bounds = array<i64: 1, 64>}, {pipeline_mode = #tpu.pipeline_mode<synchronous>, transform_indices = @transform_7, window_bounds = array<i64: 32, 32>}, {pipeline_mode = #tpu.pipeline_mode<synchronous>, transform_indices = @transform_8, window_bounds = array<i64: 1, 32>}, {pipeline_mode = #tpu.pipeline_mode<synchronous>, transform_indices = @transform_9, window_bounds = array<i64: 1, 32>}, {pipeline_mode = #tpu.pipeline_mode<synchronous>, transform_indices = @transform_10, window_bounds = array<i64: 1, 32>}, {transform_indices = @transform_11, window_bounds = array<i64: 1, 8, 32>}]} {
    %c0_i32 = arith.constant 0 : i32
    %0 = arith.cmpi eq, %arg1, %c0_i32 : i32
    %1 = arith.extui %0 : i1 to i32
    %c0_i32_0 = arith.constant 0 : i32
    %2 = arith.cmpi ne, %1, %c0_i32_0 : i32
    scf.if %2 {
      %c0_50 = arith.constant 0 : index
      %c0_51 = arith.constant 0 : index
      %c0_52 = arith.constant 0 : index
      %133 = vector.load %arg2[%c0_50, %c0_51, %c0_52] : memref<1x8x32xbf16, #tpu.memory_space<vmem>>, vector<1x8x32xbf16>
      %134 = vector.shape_cast %133 : vector<1x8x32xbf16> to vector<8x32xbf16>
      %c0_53 = arith.constant 0 : index
      %c0_54 = arith.constant 0 : index
      %135 = vector.load %arg7[%c0_53, %c0_54] : memref<32x64xbf16, #tpu.memory_space<vmem>>, vector<32x64xbf16>
      %cst_55 = arith.constant dense<0.000000e+00> : vector<8x64xf32>
      %136 = tpu.matmul %134, %135, %cst_55 {dimension_numbers = #tpu.dot_dimension_numbers<[1], [0], [0], [1], [0, 0, 1, 1], [], []>} : vector<8x32xbf16>, vector<32x64xbf16>, vector<8x64xf32> -> vector<8x64xf32>
      %c0_56 = arith.constant 0 : index
      %c0_57 = arith.constant 0 : index
      %137 = vector.load %arg8[%c0_56, %c0_57] : memref<1x64xf32, #tpu.memory_space<vmem>>, vector<1x64xf32>
      %138 = vector.broadcast %137 : vector<1x64xf32> to vector<8x64xf32>
      %139 = arith.addf %136, %138 : vector<8x64xf32>
      %140 = vector.extract_strided_slice %139 {offsets = [0, 0], sizes = [8, 32], strides = [1, 1]} : vector<8x64xf32> to vector<8x32xf32>
      %141 = arith.truncf %140 : vector<8x32xf32> to vector<8x32xbf16>
      %c0_58 = arith.constant 0 : index
      %c0_59 = arith.constant 0 : index
      %c0_60 = arith.constant 0 : index
      %142 = vector.load %arg14[%c0_58, %c0_59, %c0_60] : memref<2x8x32xbf16, #tpu.memory_space<vmem>>, vector<1x8x32xbf16>
      %143 = vector.shape_cast %142 : vector<1x8x32xbf16> to vector<8x32xbf16>
      %144 = vector.shape_cast %141 : vector<8x32xbf16> to vector<1x8x32xbf16>
      tpu.vector_store %arg14[%c0_58, %c0_59, %c0_60], %144 {strides = array<i32>} : memref<2x8x32xbf16, #tpu.memory_space<vmem>>, vector<1x8x32xbf16>,
      %145 = vector.extract_strided_slice %139 {offsets = [0, 32], sizes = [8, 32], strides = [1, 1]} : vector<8x64xf32> to vector<8x32xf32>
      %146 = arith.truncf %145 : vector<8x32xf32> to vector<8x32xbf16>
      %c1_61 = arith.constant 1 : index
      %c0_62 = arith.constant 0 : index
      %c0_63 = arith.constant 0 : index
      %147 = vector.load %arg14[%c1_61, %c0_62, %c0_63] : memref<2x8x32xbf16, #tpu.memory_space<vmem>>, vector<1x8x32xbf16>
      %148 = vector.shape_cast %147 : vector<1x8x32xbf16> to vector<8x32xbf16>
      %149 = vector.shape_cast %146 : vector<8x32xbf16> to vector<1x8x32xbf16>
      tpu.vector_store %arg14[%c1_61, %c0_62, %c0_63], %149 {strides = array<i32>} : memref<2x8x32xbf16, #tpu.memory_space<vmem>>, vector<1x8x32xbf16>,
    } else {
    }
    %c8_i32 = arith.constant 8 : i32
    %3 = arith.muli %arg1, %c8_i32 : i32
    %4 = tpu.assume_multiple %3, 8 : i32
    %c0 = arith.constant 0 : index
    %5 = arith.index_cast %4 : i32 to index
    %c0_1 = arith.constant 0 : index
    %6 = vector.load %arg2[%c0, %5, %c0_1] : memref<1x8x32xbf16, #tpu.memory_space<vmem>>, vector<1x8x32xbf16>
    %7 = vector.shape_cast %6 : vector<1x8x32xbf16> to vector<8x32xbf16>
    %c0_2 = arith.constant 0 : index
    %c0_3 = arith.constant 0 : index
    %8 = vector.load %arg5[%c0_2, %c0_3] : memref<32x32xbf16, #tpu.memory_space<vmem>>, vector<32x32xbf16>
    %cst = arith.constant dense<0.000000e+00> : vector<8x32xf32>
    %9 = tpu.matmul %7, %8, %cst {dimension_numbers = #tpu.dot_dimension_numbers<[1], [0], [0], [1], [0, 0, 1, 1], [], []>} : vector<8x32xbf16>, vector<32x32xbf16>, vector<8x32xf32> -> vector<8x32xf32>
    %c0_4 = arith.constant 0 : index
    %c0_5 = arith.constant 0 : index
    %10 = vector.load %arg6[%c0_4, %c0_5] : memref<1x32xf32, #tpu.memory_space<vmem>>, vector<1x32xf32>
    %11 = vector.broadcast %10 : vector<1x32xf32> to vector<8x32xf32>
    %12 = arith.addf %9, %11 : vector<8x32xf32>
    %cst_6 = arith.constant 0.353553385 : f32
    %13 = vector.broadcast %cst_6 : f32 to vector<8x32xf32>
    %14 = arith.mulf %12, %13 : vector<8x32xf32>
    %15 = arith.truncf %14 : vector<8x32xf32> to vector<8x32xbf16>
    %c0_7 = arith.constant 0 : index
    %c0_8 = arith.constant 0 : index
    %c0_9 = arith.constant 0 : index
    %16 = vector.load %arg14[%c0_7, %c0_8, %c0_9] : memref<2x8x32xbf16, #tpu.memory_space<vmem>>, vector<1x8x32xbf16>
    %17 = vector.shape_cast %16 : vector<1x8x32xbf16> to vector<8x32xbf16>
    %c1 = arith.constant 1 : index
    %c0_10 = arith.constant 0 : index
    %c0_11 = arith.constant 0 : index
    %18 = vector.load %arg14[%c1, %c0_10, %c0_11] : memref<2x8x32xbf16, #tpu.memory_space<vmem>>, vector<1x8x32xbf16>
    %19 = vector.shape_cast %18 : vector<1x8x32xbf16> to vector<8x32xbf16>
    %c0_12 = arith.constant 0 : index
    %c0_13 = arith.constant 0 : index
    %c0_14 = arith.constant 0 : index
    %20 = vector.load %arg4[%c0_12, %c0_13, %c0_14] : memref<1x1x8xf32, #tpu.memory_space<vmem>>, vector<1x1x8xf32>
    %21 = vector.shape_cast %20 : vector<1x1x8xf32> to vector<1x8xf32>
    %c0_15 = arith.constant 0 : index
    %c0_16 = arith.constant 0 : index
    %22 = vector.load %arg3[%c0_15, %c0_16] : memref<8x8xf32, #tpu.memory_space<vmem>>, vector<8x8xf32>
    %23 = vector.broadcast %21 : vector<1x8xf32> to vector<8x8xf32>
    %24 = arith.addf %22, %23 : vector<8x8xf32>
    %25 = vector.extract_strided_slice %15 {offsets = [0, 0], sizes = [8, 8], strides = [1, 1]} : vector<8x32xbf16> to vector<8x8xbf16>
    %26 = vector.extract_strided_slice %17 {offsets = [0, 0], sizes = [8, 8], strides = [1, 1]} : vector<8x32xbf16> to vector<8x8xbf16>
    %cst_17 = arith.constant dense<0.000000e+00> : vector<8x8xf32>
    %27 = tpu.matmul %25, %26, %cst_17 {dimension_numbers = #tpu.dot_dimension_numbers<[1], [1], [0], [0], [0, 0, 1, 0], [], []>} : vector<8x8xbf16>, vector<8x8xbf16>, vector<8x8xf32> -> vector<8x8xf32>
    %28 = arith.addf %27, %24 : vector<8x8xf32>
    %cst_18 = arith.constant dense<0xFF800000> : vector<8xf32>
    %29 = vector.multi_reduction <maximumf>, %28, %cst_18 [1] : vector<8x8xf32> to vector<8xf32>
    %30 = vector.shape_cast %29 : vector<8xf32> to vector<8x1xf32>
    %31 = vector.broadcast %30 : vector<8x1xf32> to vector<8x8xf32>
    %32 = arith.subf %28, %31 : vector<8x8xf32>
    %33 = math.exp %32 : vector<8x8xf32>
    %cst_19 = arith.constant dense<0.000000e+00> : vector<8xf32>
    %34 = vector.multi_reduction <add>, %33, %cst_19 [1] : vector<8x8xf32> to vector<8xf32>
    %35 = vector.shape_cast %34 : vector<8xf32> to vector<8x1xf32>
    %36 = tpu.reciprocal %35 {approx = true} : vector<8x1xf32> -> vector<8x1xf32>
    %37 = vector.broadcast %36 : vector<8x1xf32> to vector<8x8xf32>
    %38 = arith.mulf %33, %37 : vector<8x8xf32>
    %39 = arith.truncf %38 : vector<8x8xf32> to vector<8x8xbf16>
    %40 = vector.extract_strided_slice %19 {offsets = [0, 0], sizes = [8, 8], strides = [1, 1]} : vector<8x32xbf16> to vector<8x8xbf16>
    %cst_20 = arith.constant dense<0.000000e+00> : vector<8x8xf32>
    %41 = tpu.matmul %39, %40, %cst_20 {dimension_numbers = #tpu.dot_dimension_numbers<[1], [0], [0], [1], [0, 0, 1, 1], [], []>} : vector<8x8xbf16>, vector<8x8xbf16>, vector<8x8xf32> -> vector<8x8xf32>
    %42 = arith.truncf %41 : vector<8x8xf32> to vector<8x8xbf16>
    %43 = vector.extract_strided_slice %15 {offsets = [0, 8], sizes = [8, 8], strides = [1, 1]} : vector<8x32xbf16> to vector<8x8xbf16>
    %44 = vector.extract_strided_slice %17 {offsets = [0, 8], sizes = [8, 8], strides = [1, 1]} : vector<8x32xbf16> to vector<8x8xbf16>
    %cst_21 = arith.constant dense<0.000000e+00> : vector<8x8xf32>
    %45 = tpu.matmul %43, %44, %cst_21 {dimension_numbers = #tpu.dot_dimension_numbers<[1], [1], [0], [0], [0, 0, 1, 0], [], []>} : vector<8x8xbf16>, vector<8x8xbf16>, vector<8x8xf32> -> vector<8x8xf32>
    %46 = arith.addf %45, %24 : vector<8x8xf32>
    %cst_22 = arith.constant dense<0xFF800000> : vector<8xf32>
    %47 = vector.multi_reduction <maximumf>, %46, %cst_22 [1] : vector<8x8xf32> to vector<8xf32>
    %48 = vector.shape_cast %47 : vector<8xf32> to vector<8x1xf32>
    %49 = vector.broadcast %48 : vector<8x1xf32> to vector<8x8xf32>
    %50 = arith.subf %46, %49 : vector<8x8xf32>
    %51 = math.exp %50 : vector<8x8xf32>
    %cst_23 = arith.constant dense<0.000000e+00> : vector<8xf32>
    %52 = vector.multi_reduction <add>, %51, %cst_23 [1] : vector<8x8xf32> to vector<8xf32>
    %53 = vector.shape_cast %52 : vector<8xf32> to vector<8x1xf32>
    %54 = tpu.reciprocal %53 {approx = true} : vector<8x1xf32> -> vector<8x1xf32>
    %55 = vector.broadcast %54 : vector<8x1xf32> to vector<8x8xf32>
    %56 = arith.mulf %51, %55 : vector<8x8xf32>
    %57 = arith.truncf %56 : vector<8x8xf32> to vector<8x8xbf16>
    %58 = vector.extract_strided_slice %19 {offsets = [0, 8], sizes = [8, 8], strides = [1, 1]} : vector<8x32xbf16> to vector<8x8xbf16>
    %cst_24 = arith.constant dense<0.000000e+00> : vector<8x8xf32>
    %59 = tpu.matmul %57, %58, %cst_24 {dimension_numbers = #tpu.dot_dimension_numbers<[1], [0], [0], [1], [0, 0, 1, 1], [], []>} : vector<8x8xbf16>, vector<8x8xbf16>, vector<8x8xf32> -> vector<8x8xf32>
    %60 = arith.truncf %59 : vector<8x8xf32> to vector<8x8xbf16>
    %61 = vector.extract_strided_slice %15 {offsets = [0, 16], sizes = [8, 8], strides = [1, 1]} : vector<8x32xbf16> to vector<8x8xbf16>
    %62 = vector.extract_strided_slice %17 {offsets = [0, 16], sizes = [8, 8], strides = [1, 1]} : vector<8x32xbf16> to vector<8x8xbf16>
    %cst_25 = arith.constant dense<0.000000e+00> : vector<8x8xf32>
    %63 = tpu.matmul %61, %62, %cst_25 {dimension_numbers = #tpu.dot_dimension_numbers<[1], [1], [0], [0], [0, 0, 1, 0], [], []>} : vector<8x8xbf16>, vector<8x8xbf16>, vector<8x8xf32> -> vector<8x8xf32>
    %64 = arith.addf %63, %24 : vector<8x8xf32>
    %cst_26 = arith.constant dense<0xFF800000> : vector<8xf32>
    %65 = vector.multi_reduction <maximumf>, %64, %cst_26 [1] : vector<8x8xf32> to vector<8xf32>
    %66 = vector.shape_cast %65 : vector<8xf32> to vector<8x1xf32>
    %67 = vector.broadcast %66 : vector<8x1xf32> to vector<8x8xf32>
    %68 = arith.subf %64, %67 : vector<8x8xf32>
    %69 = math.exp %68 : vector<8x8xf32>
    %cst_27 = arith.constant dense<0.000000e+00> : vector<8xf32>
    %70 = vector.multi_reduction <add>, %69, %cst_27 [1] : vector<8x8xf32> to vector<8xf32>
    %71 = vector.shape_cast %70 : vector<8xf32> to vector<8x1xf32>
    %72 = tpu.reciprocal %71 {approx = true} : vector<8x1xf32> -> vector<8x1xf32>
    %73 = vector.broadcast %72 : vector<8x1xf32> to vector<8x8xf32>
    %74 = arith.mulf %69, %73 : vector<8x8xf32>
    %75 = arith.truncf %74 : vector<8x8xf32> to vector<8x8xbf16>
    %76 = vector.extract_strided_slice %19 {offsets = [0, 16], sizes = [8, 8], strides = [1, 1]} : vector<8x32xbf16> to vector<8x8xbf16>
    %cst_28 = arith.constant dense<0.000000e+00> : vector<8x8xf32>
    %77 = tpu.matmul %75, %76, %cst_28 {dimension_numbers = #tpu.dot_dimension_numbers<[1], [0], [0], [1], [0, 0, 1, 1], [], []>} : vector<8x8xbf16>, vector<8x8xbf16>, vector<8x8xf32> -> vector<8x8xf32>
    %78 = arith.truncf %77 : vector<8x8xf32> to vector<8x8xbf16>
    %79 = vector.extract_strided_slice %15 {offsets = [0, 24], sizes = [8, 8], strides = [1, 1]} : vector<8x32xbf16> to vector<8x8xbf16>
    %80 = vector.extract_strided_slice %17 {offsets = [0, 24], sizes = [8, 8], strides = [1, 1]} : vector<8x32xbf16> to vector<8x8xbf16>
    %cst_29 = arith.constant dense<0.000000e+00> : vector<8x8xf32>
    %81 = tpu.matmul %79, %80, %cst_29 {dimension_numbers = #tpu.dot_dimension_numbers<[1], [1], [0], [0], [0, 0, 1, 0], [], []>} : vector<8x8xbf16>, vector<8x8xbf16>, vector<8x8xf32> -> vector<8x8xf32>
    %82 = arith.addf %81, %24 : vector<8x8xf32>
    %cst_30 = arith.constant dense<0xFF800000> : vector<8xf32>
    %83 = vector.multi_reduction <maximumf>, %82, %cst_30 [1] : vector<8x8xf32> to vector<8xf32>
    %84 = vector.shape_cast %83 : vector<8xf32> to vector<8x1xf32>
    %85 = vector.broadcast %84 : vector<8x1xf32> to vector<8x8xf32>
    %86 = arith.subf %82, %85 : vector<8x8xf32>
    %87 = math.exp %86 : vector<8x8xf32>
    %cst_31 = arith.constant dense<0.000000e+00> : vector<8xf32>
    %88 = vector.multi_reduction <add>, %87, %cst_31 [1] : vector<8x8xf32> to vector<8xf32>
    %89 = vector.shape_cast %88 : vector<8xf32> to vector<8x1xf32>
    %90 = tpu.reciprocal %89 {approx = true} : vector<8x1xf32> -> vector<8x1xf32>
    %91 = vector.broadcast %90 : vector<8x1xf32> to vector<8x8xf32>
    %92 = arith.mulf %87, %91 : vector<8x8xf32>
    %93 = arith.truncf %92 : vector<8x8xf32> to vector<8x8xbf16>
    %94 = vector.extract_strided_slice %19 {offsets = [0, 24], sizes = [8, 8], strides = [1, 1]} : vector<8x32xbf16> to vector<8x8xbf16>
    %cst_32 = arith.constant dense<0.000000e+00> : vector<8x8xf32>
    %95 = tpu.matmul %93, %94, %cst_32 {dimension_numbers = #tpu.dot_dimension_numbers<[1], [0], [0], [1], [0, 0, 1, 1], [], []>} : vector<8x8xbf16>, vector<8x8xbf16>, vector<8x8xf32> -> vector<8x8xf32>
    %96 = arith.truncf %95 : vector<8x8xf32> to vector<8x8xbf16>
    %97 = tpu.concatenate %42, %60, %78, %96 in 1 : vector<8x8xbf16>, vector<8x8xbf16>, vector<8x8xbf16>, vector<8x8xbf16> -> vector<8x32xbf16>
    %c0_33 = arith.constant 0 : index
    %c0_34 = arith.constant 0 : index
    %98 = vector.load %arg9[%c0_33, %c0_34] : memref<32x32xbf16, #tpu.memory_space<vmem>>, vector<32x32xbf16>
    %cst_35 = arith.constant dense<0.000000e+00> : vector<8x32xf32>
    %99 = tpu.matmul %97, %98, %cst_35 {dimension_numbers = #tpu.dot_dimension_numbers<[1], [0], [0], [1], [0, 0, 1, 1], [], []>} : vector<8x32xbf16>, vector<32x32xbf16>, vector<8x32xf32> -> vector<8x32xf32>
    %c0_36 = arith.constant 0 : index
    %c0_37 = arith.constant 0 : index
    %100 = vector.load %arg10[%c0_36, %c0_37] : memref<1x32xf32, #tpu.memory_space<vmem>>, vector<1x32xf32>
    %101 = vector.broadcast %100 : vector<1x32xf32> to vector<8x32xf32>
    %102 = arith.addf %99, %101 : vector<8x32xf32>
    %103 = arith.extf %7 : vector<8x32xbf16> to vector<8x32xf32>
    %104 = arith.addf %103, %102 : vector<8x32xf32>
    %c0_38 = arith.constant 0 : index
    %c0_39 = arith.constant 0 : index
    %105 = vector.load %arg11[%c0_38, %c0_39] : memref<1x32xf32, #tpu.memory_space<vmem>>, vector<1x32xf32>
    %c0_40 = arith.constant 0 : index
    %c0_41 = arith.constant 0 : index
    %106 = vector.load %arg12[%c0_40, %c0_41] : memref<1x32xf32, #tpu.memory_space<vmem>>, vector<1x32xf32>
    %cst_42 = arith.constant dense<0.000000e+00> : vector<8xf32>
    %107 = vector.multi_reduction <add>, %104, %cst_42 [1] : vector<8x32xf32> to vector<8xf32>
    %108 = vector.shape_cast %107 : vector<8xf32> to vector<8x1xf32>
    %cst_43 = arith.constant 3.200000e+01 : f32
    %109 = vector.broadcast %cst_43 : f32 to vector<8x1xf32>
    %110 = arith.divf %108, %109 : vector<8x1xf32>
    %111 = vector.broadcast %110 : vector<8x1xf32> to vector<8x32xf32>
    %112 = arith.subf %104, %111 : vector<8x32xf32>
    %113 = arith.mulf %112, %112 : vector<8x32xf32>
    %cst_44 = arith.constant dense<0.000000e+00> : vector<8xf32>
    %114 = vector.multi_reduction <add>, %113, %cst_44 [1] : vector<8x32xf32> to vector<8xf32>
    %115 = vector.shape_cast %114 : vector<8xf32> to vector<8x1xf32>
    %cst_45 = arith.constant 3.200000e+01 : f32
    %116 = vector.broadcast %cst_45 : f32 to vector<8x1xf32>
    %117 = arith.divf %115, %116 : vector<8x1xf32>
    %118 = vector.broadcast %110 : vector<8x1xf32> to vector<8x32xf32>
    %119 = arith.subf %104, %118 : vector<8x32xf32>
    %cst_46 = arith.constant 9.99999974E-6 : f32
    %120 = vector.broadcast %cst_46 : f32 to vector<8x1xf32>
    %121 = arith.addf %117, %120 : vector<8x1xf32>
    %122 = math.rsqrt %121 : vector<8x1xf32>
    %123 = vector.broadcast %122 : vector<8x1xf32> to vector<8x32xf32>
    %124 = arith.mulf %119, %123 : vector<8x32xf32>
    %125 = vector.broadcast %105 : vector<1x32xf32> to vector<8x32xf32>
    %126 = arith.mulf %124, %125 : vector<8x32xf32>
    %127 = vector.broadcast %106 : vector<1x32xf32> to vector<8x32xf32>
    %128 = arith.addf %126, %127 : vector<8x32xf32>
    %129 = arith.truncf %128 : vector<8x32xf32> to vector<8x32xbf16>
    %c0_47 = arith.constant 0 : index
    %c0_48 = arith.constant 0 : index
    %c0_49 = arith.constant 0 : index
    %130 = vector.load %arg13[%c0_47, %c0_48, %c0_49] : memref<1x8x32xbf16, #tpu.memory_space<vmem>>, vector<1x8x32xbf16>
    %131 = vector.shape_cast %130 : vector<1x8x32xbf16> to vector<8x32xbf16>
    %132 = vector.shape_cast %129 : vector<8x32xbf16> to vector<1x8x32xbf16>
    tpu.vector_store %arg13[%c0_47, %c0_48, %c0_49], %132 {strides = array<i32>} : memref<1x8x32xbf16, #tpu.memory_space<vmem>>, vector<1x8x32xbf16>,
    return
  }
  func.func @transform_0(%arg0: i32, %arg1: i32) -> (i32, i32, i32) {
    %c0_i32 = arith.constant 0 : i32
    %c0_i32_0 = arith.constant 0 : i32
    %c0_i32_1 = arith.constant 0 : i32
    return %arg0, %c0_i32, %c0_i32_0 : i32, i32, i32
  }
  func.func @transform_1(%arg0: i32, %arg1: i32) -> (i32, i32) {
    %c0_i32 = arith.constant 0 : i32
    %c0_i32_0 = arith.constant 0 : i32
    return %arg1, %c0_i32 : i32, i32
  }
  func.func @transform_2(%arg0: i32, %arg1: i32) -> (i32, i32, i32) {
    %c0_i32 = arith.constant 0 : i32
    %c0_i32_0 = arith.constant 0 : i32
    %c0_i32_1 = arith.constant 0 : i32
    return %arg0, %c0_i32, %c0_i32_0 : i32, i32, i32
  }
  func.func @transform_3(%arg0: i32, %arg1: i32) -> (i32, i32) {
    %c0_i32 = arith.constant 0 : i32
    %c0_i32_0 = arith.constant 0 : i32
    %c0_i32_1 = arith.constant 0 : i32
    return %c0_i32, %c0_i32_0 : i32, i32
  }
  func.func @transform_4(%arg0: i32, %arg1: i32) -> (i32, i32) {
    %c0_i32 = arith.constant 0 : i32
    %c0_i32_0 = arith.constant 0 : i32
    %c0_i32_1 = arith.constant 0 : i32
    return %c0_i32, %c0_i32_0 : i32, i32
  }
  func.func @transform_5(%arg0: i32, %arg1: i32) -> (i32, i32) {
    %c0_i32 = arith.constant 0 : i32
    %c0_i32_0 = arith.constant 0 : i32
    %c0_i32_1 = arith.constant 0 : i32
    return %c0_i32, %c0_i32_0 : i32, i32
  }
  func.func @transform_6(%arg0: i32, %arg1: i32) -> (i32, i32) {
    %c0_i32 = arith.constant 0 : i32
    %c0_i32_0 = arith.constant 0 : i32
    %c0_i32_1 = arith.constant 0 : i32
    return %c0_i32, %c0_i32_0 : i32, i32
  }
  func.func @transform_7(%arg0: i32, %arg1: i32) -> (i32, i32) {
    %c0_i32 = arith.constant 0 : i32
    %c0_i32_0 = arith.constant 0 : i32
    %c0_i32_1 = arith.constant 0 : i32
    return %c0_i32, %c0_i32_0 : i32, i32
  }
  func.func @transform_8(%arg0: i32, %arg1: i32) -> (i32, i32) {
    %c0_i32 = arith.constant 0 : i32
    %c0_i32_0 = arith.constant 0 : i32
    %c0_i32_1 = arith.constant 0 : i32
    return %c0_i32, %c0_i32_0 : i32, i32
  }
  func.func @transform_9(%arg0: i32, %arg1: i32) -> (i32, i32) {
    %c0_i32 = arith.constant 0 : i32
    %c0_i32_0 = arith.constant 0 : i32
    %c0_i32_1 = arith.constant 0 : i32
    return %c0_i32, %c0_i32_0 : i32, i32
  }
  func.func @transform_10(%arg0: i32, %arg1: i32) -> (i32, i32) {
    %c0_i32 = arith.constant 0 : i32
    %c0_i32_0 = arith.constant 0 : i32
    %c0_i32_1 = arith.constant 0 : i32
    return %c0_i32, %c0_i32_0 : i32, i32
  }
  func.func @transform_11(%arg0: i32, %arg1: i32) -> (i32, i32, i32) {
    %c0_i32 = arith.constant 0 : i32
    %c0_i32_0 = arith.constant 0 : i32
    return %arg0, %arg1, %c0_i32 : i32, i32, i32
  }
}

module attributes {stable_mosaic.version = 11 : i64} {
  func.func @_ffn_block_kernel(%arg0: i32, %arg1: memref<16x32xbf16, #tpu.memory_space<vmem>>, %arg2: memref<32x64xbf16, #tpu.memory_space<vmem>>, %arg3: memref<1x64xf32, #tpu.memory_space<vmem>>, %arg4: memref<64x32xbf16, #tpu.memory_space<vmem>>, %arg5: memref<1x32xf32, #tpu.memory_space<vmem>>, %arg6: memref<1x32xf32, #tpu.memory_space<vmem>>, %arg7: memref<1x32xf32, #tpu.memory_space<vmem>>, %arg8: memref<16x32xbf16, #tpu.memory_space<vmem>>) attributes {dimension_semantics = [#tpu.dimension_semantics<parallel>], iteration_bounds = array<i64: 1>, scalar_prefetch = 0 : i64, scratch_operands = 0 : i64, tpu.core_type = #tpu.core_type<tc>, window_params = [{transform_indices = @transform_0, window_bounds = array<i64: 16, 32>}, {pipeline_mode = #tpu.pipeline_mode<synchronous>, transform_indices = @transform_1, window_bounds = array<i64: 32, 64>}, {pipeline_mode = #tpu.pipeline_mode<synchronous>, transform_indices = @transform_2, window_bounds = array<i64: 1, 64>}, {pipeline_mode = #tpu.pipeline_mode<synchronous>, transform_indices = @transform_3, window_bounds = array<i64: 64, 32>}, {pipeline_mode = #tpu.pipeline_mode<synchronous>, transform_indices = @transform_4, window_bounds = array<i64: 1, 32>}, {pipeline_mode = #tpu.pipeline_mode<synchronous>, transform_indices = @transform_5, window_bounds = array<i64: 1, 32>}, {pipeline_mode = #tpu.pipeline_mode<synchronous>, transform_indices = @transform_6, window_bounds = array<i64: 1, 32>}, {transform_indices = @transform_7, window_bounds = array<i64: 16, 32>}]} {
    %c0 = arith.constant 0 : index
    %c0_0 = arith.constant 0 : index
    %0 = vector.load %arg1[%c0, %c0_0] : memref<16x32xbf16, #tpu.memory_space<vmem>>, vector<16x32xbf16>
    %c0_1 = arith.constant 0 : index
    %c0_2 = arith.constant 0 : index
    %1 = vector.load %arg2[%c0_1, %c0_2] : memref<32x64xbf16, #tpu.memory_space<vmem>>, vector<32x64xbf16>
    %cst = arith.constant dense<0.000000e+00> : vector<16x64xf32>
    %2 = tpu.matmul %0, %1, %cst {dimension_numbers = #tpu.dot_dimension_numbers<[1], [0], [0], [1], [0, 0, 1, 1], [], []>} : vector<16x32xbf16>, vector<32x64xbf16>, vector<16x64xf32> -> vector<16x64xf32>
    %c0_3 = arith.constant 0 : index
    %c0_4 = arith.constant 0 : index
    %3 = vector.load %arg3[%c0_3, %c0_4] : memref<1x64xf32, #tpu.memory_space<vmem>>, vector<1x64xf32>
    %4 = vector.broadcast %3 : vector<1x64xf32> to vector<16x64xf32>
    %5 = arith.addf %2, %4 : vector<16x64xf32>
    %cst_5 = arith.constant 0.000000e+00 : f32
    %6 = vector.broadcast %cst_5 : f32 to vector<16x64xf32>
    %7 = arith.maximumf %5, %6 : vector<16x64xf32>
    %8 = arith.truncf %7 : vector<16x64xf32> to vector<16x64xbf16>
    %c0_6 = arith.constant 0 : index
    %c0_7 = arith.constant 0 : index
    %9 = vector.load %arg4[%c0_6, %c0_7] : memref<64x32xbf16, #tpu.memory_space<vmem>>, vector<64x32xbf16>
    %cst_8 = arith.constant dense<0.000000e+00> : vector<16x32xf32>
    %10 = tpu.matmul %8, %9, %cst_8 {dimension_numbers = #tpu.dot_dimension_numbers<[1], [0], [0], [1], [0, 0, 1, 1], [], []>} : vector<16x64xbf16>, vector<64x32xbf16>, vector<16x32xf32> -> vector<16x32xf32>
    %c0_9 = arith.constant 0 : index
    %c0_10 = arith.constant 0 : index
    %11 = vector.load %arg5[%c0_9, %c0_10] : memref<1x32xf32, #tpu.memory_space<vmem>>, vector<1x32xf32>
    %12 = vector.broadcast %11 : vector<1x32xf32> to vector<16x32xf32>
    %13 = arith.addf %10, %12 : vector<16x32xf32>
    %14 = arith.extf %0 : vector<16x32xbf16> to vector<16x32xf32>
    %15 = arith.addf %14, %13 : vector<16x32xf32>
    %c0_11 = arith.constant 0 : index
    %c0_12 = arith.constant 0 : index
    %16 = vector.load %arg6[%c0_11, %c0_12] : memref<1x32xf32, #tpu.memory_space<vmem>>, vector<1x32xf32>
    %c0_13 = arith.constant 0 : index
    %c0_14 = arith.constant 0 : index
    %17 = vector.load %arg7[%c0_13, %c0_14] : memref<1x32xf32, #tpu.memory_space<vmem>>, vector<1x32xf32>
    %cst_15 = arith.constant dense<0.000000e+00> : vector<16xf32>
    %18 = vector.multi_reduction <add>, %15, %cst_15 [1] : vector<16x32xf32> to vector<16xf32>
    %19 = vector.shape_cast %18 : vector<16xf32> to vector<16x1xf32>
    %cst_16 = arith.constant 3.200000e+01 : f32
    %20 = vector.broadcast %cst_16 : f32 to vector<16x1xf32>
    %21 = arith.divf %19, %20 : vector<16x1xf32>
    %22 = vector.broadcast %21 : vector<16x1xf32> to vector<16x32xf32>
    %23 = arith.subf %15, %22 : vector<16x32xf32>
    %24 = arith.mulf %23, %23 : vector<16x32xf32>
    %cst_17 = arith.constant dense<0.000000e+00> : vector<16xf32>
    %25 = vector.multi_reduction <add>, %24, %cst_17 [1] : vector<16x32xf32> to vector<16xf32>
    %26 = vector.shape_cast %25 : vector<16xf32> to vector<16x1xf32>
    %cst_18 = arith.constant 3.200000e+01 : f32
    %27 = vector.broadcast %cst_18 : f32 to vector<16x1xf32>
    %28 = arith.divf %26, %27 : vector<16x1xf32>
    %29 = vector.broadcast %21 : vector<16x1xf32> to vector<16x32xf32>
    %30 = arith.subf %15, %29 : vector<16x32xf32>
    %cst_19 = arith.constant 9.99999974E-6 : f32
    %31 = vector.broadcast %cst_19 : f32 to vector<16x1xf32>
    %32 = arith.addf %28, %31 : vector<16x1xf32>
    %33 = math.rsqrt %32 : vector<16x1xf32>
    %34 = vector.broadcast %33 : vector<16x1xf32> to vector<16x32xf32>
    %35 = arith.mulf %30, %34 : vector<16x32xf32>
    %36 = vector.broadcast %16 : vector<1x32xf32> to vector<16x32xf32>
    %37 = arith.mulf %35, %36 : vector<16x32xf32>
    %38 = vector.broadcast %17 : vector<1x32xf32> to vector<16x32xf32>
    %39 = arith.addf %37, %38 : vector<16x32xf32>
    %40 = arith.truncf %39 : vector<16x32xf32> to vector<16x32xbf16>
    %c0_20 = arith.constant 0 : index
    %c0_21 = arith.constant 0 : index
    %41 = vector.load %arg8[%c0_20, %c0_21] : memref<16x32xbf16, #tpu.memory_space<vmem>>, vector<16x32xbf16>
    tpu.vector_store %arg8[%c0_20, %c0_21], %40 {strides = array<i32>} : memref<16x32xbf16, #tpu.memory_space<vmem>>, vector<16x32xbf16>,
    return
  }
  func.func @transform_0(%arg0: i32) -> (i32, i32) {
    %c0_i32 = arith.constant 0 : i32
    %c0_i32_0 = arith.constant 0 : i32
    return %arg0, %c0_i32 : i32, i32
  }
  func.func @transform_1(%arg0: i32) -> (i32, i32) {
    %c0_i32 = arith.constant 0 : i32
    %c0_i32_0 = arith.constant 0 : i32
    %c0_i32_1 = arith.constant 0 : i32
    return %c0_i32, %c0_i32_0 : i32, i32
  }
  func.func @transform_2(%arg0: i32) -> (i32, i32) {
    %c0_i32 = arith.constant 0 : i32
    %c0_i32_0 = arith.constant 0 : i32
    %c0_i32_1 = arith.constant 0 : i32
    return %c0_i32, %c0_i32_0 : i32, i32
  }
  func.func @transform_3(%arg0: i32) -> (i32, i32) {
    %c0_i32 = arith.constant 0 : i32
    %c0_i32_0 = arith.constant 0 : i32
    %c0_i32_1 = arith.constant 0 : i32
    return %c0_i32, %c0_i32_0 : i32, i32
  }
  func.func @transform_4(%arg0: i32) -> (i32, i32) {
    %c0_i32 = arith.constant 0 : i32
    %c0_i32_0 = arith.constant 0 : i32
    %c0_i32_1 = arith.constant 0 : i32
    return %c0_i32, %c0_i32_0 : i32, i32
  }
  func.func @transform_5(%arg0: i32) -> (i32, i32) {
    %c0_i32 = arith.constant 0 : i32
    %c0_i32_0 = arith.constant 0 : i32
    %c0_i32_1 = arith.constant 0 : i32
    return %c0_i32, %c0_i32_0 : i32, i32
  }
  func.func @transform_6(%arg0: i32) -> (i32, i32) {
    %c0_i32 = arith.constant 0 : i32
    %c0_i32_0 = arith.constant 0 : i32
    %c0_i32_1 = arith.constant 0 : i32
    return %c0_i32, %c0_i32_0 : i32, i32
  }
  func.func @transform_7(%arg0: i32) -> (i32, i32) {
    %c0_i32 = arith.constant 0 : i32
    %c0_i32_0 = arith.constant 0 : i32
    return %arg0, %c0_i32 : i32, i32
  }
}

</mosaic_0001>

<bundles_post_ra>
// kernel: transformer_decoder.8
= control target key start
LH: loop header
LB: loop body
LE: loop exit
PB: predicated region body
PF: predicated region fallthrough
CT: control target
= control target key end

     0   :  { %v312_v0 = vmov 0.0   ;;  %vm313_vm0 = vmmov 0   ;;  %vm57_vm1 = vcmask 261120   ;;  %vm144_vm2 = vcmask 523264   ;;  %s398_s1 = inlined_call_operand.vmem [shape: bf16[32,64], index: 1, kind: input, shape index: {}]   ;;  %s399_s0 = inlined_call_operand.vmem [shape: bf16[16,32], index: 0, kind: input, shape index: {}]   ;;  %s400_s3 = inlined_call_operand.vmem [shape: bf16[64,32], index: 3, kind: input, shape index: {}]   ;;  %s401_s2 = inlined_call_operand.vmem [shape: f32[1,64], index: 2, kind: input, shape index: {}]   ;;  %s402_s4 = inlined_call_operand.vmem [shape: f32[1,32], index: 4, kind: input, shape index: {}]   ;;  %s403_s5 = inlined_call_operand.vmem [shape: f32[1,32], index: 5, kind: input, shape index: {}]   ;;  %s404_s6 = inlined_call_operand.vmem [shape: f32[1,32], index: 6, kind: input, shape index: {}]   ;;  %s405_s7 = inlined_call_operand.vmem [shape: bf16[16,32], index: 7, kind: output, shape index: {}]  }
   0x1   :  { %278 = vmatprep.subr.bf16.mxu0 %v312_v0  ;;  %v300_v1 = vld [vmem:[%s398_s1 + $0x8] sm:$0xff]   ;;  %282 = vmatprep.mubr.msk.bf16.mxu0 %vm313_vm0, %v312_v0  ;;  %v301_v2 = vld [vmem:[%s398_s1] sm:$0xff]   ;;  %v303_v4 = vld [vmem:[%s400_s3 + $0x18] sm:$0xff]   ;;  %vm246_vm3 = vcmask 257024  }
   0x2   :  { %286 = vmatprep.subr.bf16.mxu1 %v312_v0  ;;  %294 = vmatprep.mubr.msk.bf16.mxu1 %vm313_vm0, %v312_v0  ;;  %v27_v3 = vld [vmem:[%s399_s0] sm:$0xff]   ;;  %v304_v5 = vld [vmem:[%s400_s3 + $0x10] sm:$0xff]   ;;  %v305_v6 = vld [vmem:[%s400_s3 + $0x8] sm:$0xff]  }
   0x3   :  { %279 = vmatpush3.bf16.msra.mxu0 %v300_v1  ;;  %287 = vmatpush3.bf16.msra.mxu1 %v303_v4  ;;  %v306_v7 = vld [vmem:[%s400_s3] sm:$0xff]   ;;  %v189_v19 = vunpack.c.l.bf16 %v27_v3  ;;  %v190_v24 = vunpack.c.h.bf16 %v27_v3 }
   0x4   :  { %280 = vmatprep.subr.bf16.mxu0 %v312_v0  ;;  %288 = vmatprep.subr.bf16.mxu1 %v312_v0  ;;  %v253_v8 = vld [vmem:[%s401_s2] ss:$0 sm:$0xff] }
   0x5   :  { %v258_v18 = vld [vmem:[%s402_s4] ss:$0 sm:$0xff] }
   0x6   :  { %v264_v48 = vld [vmem:[%s403_s5] ss:$0 sm:$0xff] }
   0x7   :  { %281 = vmatpush3.bf16.msra.mxu0 %v301_v2  ;;  %289 = vmatpush3.bf16.msra.mxu1 %v304_v5  ;;  %v265_v50 = vld [vmem:[%s404_s6] ss:$0 sm:$0xff] }
   0x8   :  { %290 = vmatprep.subr.bf16.mxu1 %v312_v0 }
   0xa   :  { %283 = vmatmul.mubr.msk.bf16.vlgmr.msra.gmra.mxu0 %vm57_vm1, %v27_v3 }
   0xb   :  { %291 = vmatpush3.bf16.msra.mxu1 %v305_v6 }
   0xc   :  { %292 = vmatprep.subr.bf16.mxu1 %v312_v0 }
   0xf   :  { %293 = vmatpush3.bf16.msra.mxu1 %v306_v7 }
  0xca   :  { %v95_v9 = vpop.f32.mrf.mxu0 }
  0xcb   :  { %v96_v11 = vadd.f32 %v253_v8, %v95_v9 }
  0xcc   :  { %v284_v10 = vpop.f32.mrf.mxu0 }
  0xcd   :  { %v102_v15 = vmax.f32 %v96_v11, 0.0 }
  0xce   :  { %v98_v12 = vpop.f32.mrf.mxu0 }
  0xcf   :  { %v99_v13 = vadd.f32 %v253_v8, %v98_v12 }
  0xd0   :  { %v285_v14 = vpop.f32.mrf.mxu0 }
  0xd1   :  { %v103_v16 = vmax.f32 %v99_v13, 0.0 }
  0xd3   :  { %v104_v17 = vpack.c.bf16 %v103_v16, %v102_v15 }
  0xd5   :  { %295 = vmatmul.mubr.msk.bf16.vlgmr.msra.gmra.mxu1 %vm144_vm2, %v104_v17 }
 0x195   :  { %v182_v20 = vpop.f32.mrf.mxu1 }
 0x196   :  { %v183_v21 = vadd.f32 %v258_v18, %v182_v20 }
 0x197   :  { %v296_v22 = vpop.f32.mrf.mxu1 }
 0x198   :  { %v191_v23 = vadd.f32 %v189_v19, %v183_v21 }
 0x199   :  { %v185_v25 = vpop.f32.mrf.mxu1 }
 0x19a   :  { %v186_v26 = vadd.f32 %v258_v18, %v185_v25  ;;  %v195_v27 = vsel %vm57_vm1, %v191_v23, 0.0 }
 0x19b   :  { %196 = vadd.xlane.f32.xlu0 %v195_v27  ;;  %v297_v28 = vpop.f32.mrf.mxu1 }
 0x19c   :  { %v192_v29 = vadd.f32 %v190_v24, %v186_v26 }
 0x19e   :  { %v198_v30 = vsel %vm57_vm1, %v192_v29, 0.0 }
 0x19f   :  { %199 = vadd.xlane.f32.xlu0 %v198_v30 }
 0x224   :  { %v197_v31 = vpop.xlane.xlu0 %196 }
 0x225   :  { %v202_v32 = vmul.f32 0.03125, %v197_v31 }
 0x227   :  { %v204_v33 = vsub.f32 %v191_v23, %v202_v32 }
 0x228   :  { %v200_v34 = vpop.xlane.xlu0 %199 }
 0x229   :  { %v203_v35 = vmul.f32 0.03125, %v200_v34  ;;  %v206_v36 = vmul.f32 %v204_v33, %v204_v33 }
 0x22b   :  { %v205_v37 = vsub.f32 %v192_v29, %v203_v35  ;;  %v208_v38 = vsel %vm57_vm1, %v206_v36, 0.0 }
 0x22c   :  { %209 = vadd.xlane.f32.xlu1 %v208_v38 }
 0x22d   :  { %v207_v39 = vmul.f32 %v205_v37, %v205_v37 }
 0x22f   :  { %v211_v40 = vsel %vm57_vm1, %v207_v39, 0.0 }
 0x230   :  { %212 = vadd.xlane.f32.xlu1 %v211_v40 }
 0x2b5   :  { %v210_v41 = vpop.xlane.xlu1 %209 }
 0x2b6   :  { %v214_v42 = vmul.f32 0.03125, %v210_v41 }
 0x2b8   :  { %v216_v43 = vadd.f32 1e-05, %v214_v42 }
 0x2b9   :  { %v213_v44 = vpop.xlane.xlu1 %212 }
 0x2ba   :  { %308 = vrsqrt.f32 %v216_v43  ;;  %v215_v45 = vmul.f32 0.03125, %v213_v44 }
 0x2bc   :  { %v217_v46 = vadd.f32 1e-05, %v215_v45 }
 0x2be   :  { %310 = vrsqrt.f32 %v217_v46 }
 0x2c7   :  { %v309_v47 = vpop.eup %308 }
 0x2c8   :  { %v220_v49 = vmul.f32 %v309_v47, %v204_v33 }
 0x2ca   :  { %v228_v51 = vmul.f32 %v264_v48, %v220_v49 }
 0x2cb   :  { %v311_v52 = vpop.eup %310 }
 0x2cc   :  { %v236_v53 = vadd.f32 %v265_v50, %v228_v51  ;;  %v221_v54 = vmul.f32 %v311_v52, %v205_v37 }
 0x2ce   :  { %v268_v55 = vpack.c.bf16 %v236_v53, %v236_v53  ;;  %v229_v56 = vmul.f32 %v264_v48, %v221_v54 }
 0x2d0   :  { %247 = vst.msk [vmem:[%s405_s7] sm:$0xf] %vm246_vm3, %v268_v55  ;;  %v237_v57 = vadd.f32 %v265_v50, %v229_v56 }
 0x2d2   :  { %v269_v58 = vpack.c.bf16 %v237_v57, %v237_v57 }
 0x2d4   :  { %248 = vst.msk [vmem:[%s405_s7 + $0x4] sm:$0xf] %vm246_vm3, %v269_v58 }

// kernel: transformer_decoder.6
= control target key start
LH: loop header
LB: loop body
LE: loop exit
PB: predicated region body
PF: predicated region fallthrough
CT: control target
= control target key end

     0   :  { %s1553_s17 = smov 0   ;;  %s1555_s18 = smov 0   ;;  %s1719_s0 = inlined_call_operand.vmem [shape: bf16[2,8,32], index: 0, kind: input, shape index: {}]   ;;  %s1720_s1 = inlined_call_operand.vmem [shape: f32[8,8], index: 1, kind: input, shape index: {}]   ;;  %s1721_s2 = inlined_call_operand.vmem [shape: f32[2,1,8], index: 2, kind: input, shape index: {}]   ;;  %s1722_s3 = inlined_call_operand.vmem [shape: bf16[32,32], index: 3, kind: input, shape index: {}]   ;;  %s1723_s4 = inlined_call_operand.vmem [shape: f32[1,32], index: 4, kind: input, shape index: {}]   ;;  %s1724_s5 = inlined_call_operand.vmem [shape: bf16[32,64], index: 5, kind: input, shape index: {}]   ;;  %s1725_s6 = inlined_call_operand.vmem [shape: f32[1,64], index: 6, kind: input, shape index: {}]   ;;  %s1726_s7 = inlined_call_operand.vmem [shape: bf16[32,32], index: 7, kind: input, shape index: {}]   ;;  %s1727_s8 = inlined_call_operand.vmem [shape: f32[1,32], index: 8, kind: input, shape index: {}]   ;;  %s1728_s9 = inlined_call_operand.vmem [shape: f32[1,32], index: 9, kind: input, shape index: {}]   ;;  %s1729_s10 = inlined_call_operand.vmem [shape: f32[1,32], index: 10, kind: input, shape index: {}]   ;;  %s1730_s11 = inlined_call_operand.vmem [shape: bf16[2,8,32], index: 11, kind: output, shape index: {}]  }
   0x1   :  { %s1557_s19 = smov 0  }
   0x2 LB: > { %s33_s20 = sadd.s32 1, %s1478_s18  ;;  %p1272_p0 = scmp.ge.s32.totalorder %s1482_s19, 1  ;;  %s1482_s19 = sphi %s1557_s19, %s21_s19   ;;  %s1478_s18 = sphi %s1555_s18, %s1732_s18   ;;  %s1474_s17 = sphi %s1553_s17, %s1731_s17  }
   0x3   : > { %p35_p1 = scmp.ge.s32.totalorder %s33_s20, 2  ;;  %p367_p2 = scmp.lt.s32.totalorder %s1482_s19, 3 }
   0x5   : > { %s1734_s20 = smov (%p35_p1, %s33_s20), 0  ;;  %p368_p3 = pnand %p1272_p0, %p367_p2 }
   0x6   : > { %p415_p4 = scmp.lt.s32.totalorder (!%p368_p3), %s1474_s17, 1  ;;  %s1486_s22 = smov (!%p368_p3), 112  }
   0x7   : > { %371 = sbr.rel (%p368_p3) target bundleno = 1695 (0x69f), region = 64  ;;  %s1487_s23 = smov (!%p368_p3), 120  }
   0x8   : > { %s1488_s24 = smov (!%p368_p3), 104   ;;  %s1489_s12 = smov (!%p368_p3), 96  }
   0x9   : > { %s1490_s21 = smov (!%p368_p3), 8  }
   0xc   : > { %v1434_v0 = vld [vmem:[%s1724_s5 + $0x8] sm:$0xff]   ;;  %v1484_v1 = vmov 0.0   ;;  %v1435_v2 = vld [vmem:[%s1724_s5] sm:$0xff]   ;;  %vm1485_vm0 = vmmov 0   ;;  %s1736_s17 = smov (!%p415_p4, %s1474_s17), 1  ;;  %vm462_vm1 = vcmask 261120  }
   0xd   : > { %1329 = vmatprep.subr.bf16.mxu0 %v1484_v1  ;;  %1337 = vmatprep.subr.bf16.mxu1 %v1484_v1  ;;  %v1436_v3 = vld [vmem:[%s1722_s3 + $0x8] sm:$0xff]   ;;  %v1437_v4 = vld [vmem:[%s1722_s3] sm:$0xff]   ;;  %s1273_s29 = sshll.u32 %s1736_s17, 2  ;;  %vm507_vm2 = vcmask 257024   ;;  %vm604_vm3 = vcmask 64512   ;;  %s425_s27 = scalar_lea.vmem %s1721_s2, %s1736_s17  ;;  %vm666_vm4 = vcmask 1043456  }
   0xe   : > { %1330 = vmatpush3.bf16.msra.mxu0 %v1434_v0  ;;  %1333 = vmatprep.mubr.msk.bf16.mxu0 %vm1485_vm0, %v1484_v1  ;;  %s418_s13 = scalar_lea.vmem %s1719_s0, %s1273_s29  ;;  %v1275_v7 = vld [vmem:[%s1725_s6] ss:$0 sm:$0xff]  ;;  %vm1063_vm5 = vcmask 130048   ;;  %vm1066_vm6 = vcmask 195584   ;;  %s432_s14 = scalar_lea.vmem %s1730_s11, %s1273_s29 }
   0xf   : > { %1331 = vmatprep.subr.bf16.mxu0 %v1484_v1  ;;  %1341 = vmatprep.mubr.msk.bf16.mxu1 %vm1485_vm0, %v1484_v1  ;;  %v438_v5 = vld [vmem:[%s418_s13] sm:$0xf] }
  0x10   : > { %1338 = vmatpush3.bf16.msra.mxu1 %v1436_v3  ;;  %v1601_v6 = vld [vmem:[%s418_s13] sm:$0xf] }
  0x11   : > { %1339 = vmatprep.subr.bf16.mxu1 %v1484_v1  ;;  %v1280_v14 = vld [vmem:[%s1723_s4] ss:$0 sm:$0xff] }
  0x12   : > { %1332 = vmatpush3.bf16.msra.mxu0 %v1435_v2  ;;  %v1284_v34 = vld [vmem:[%s425_s27] ss:$0 sm:$0xff] }
  0x13   : > { %1345 = vmatprep.subr.bf16.mxu0 %v1484_v1  ;;  %v596_v35 = vld [vmem:[%s1720_s1] sm:$0xff] }
  0x14   : > { %1340 = vmatpush3.bf16.msra.mxu1 %v1437_v4  ;;  %v603_v36 = vadd.f32 %v1284_v34, %v596_v35 }
  0x15   : > { %1334 = vmatmul.mubr.msk.bf16.vlgmr.msra.gmra.mxu0 %vm462_vm1, %v438_v5  ;;  %1351 = vmatprep.subr.bf16.mxu1 %v1484_v1 }
  0x16   : > { %1347 = vmatprep.mubr.msk.bf16.mxu0 %vm1485_vm0, %v1484_v1 }
  0x17   : > { %1342 = vmatmul.mubr.msk.bf16.vlgmr.msra.gmra.mxu1 %vm462_vm1, %v1601_v6 }
  0x18   : > { %1353 = vmatprep.mubr.msk.bf16.mxu1 %vm1485_vm0, %v1484_v1 }
  0xd5   : > { %v500_v8 = vpop.f32.mrf.mxu0 }
  0xd6   : > { %v501_v9 = vadd.f32 %v1275_v7, %v500_v8 }
  0xd7   : > { %v1335_v10 = vpop.f32.mrf.mxu0  ;;  %v584_v12 = vpop.f32.mrf.mxu1 }
  0xd8   : > { %v1613_v11 = vpack.c.bf16 %v501_v9, %v501_v9  ;;  %v585_v17 = vadd.f32 %v1280_v14, %v584_v12 }
  0xd9   : > { %v503_v13 = vpop.f32.mrf.mxu0  ;;  %v1343_v15 = vpop.f32.mrf.mxu1 }
  0xda   : > { %508 = vst.msk [vmem:[#allocation2] sm:$0xf] %vm507_vm2, %v1613_v11  ;;  %v590_v20 = vmul.f32 0.35355338, %v585_v17 }
  0xdb   : > { %v1336_v16 = vpop.f32.mrf.mxu0  ;;  %v587_v18 = vpop.f32.mrf.mxu1 }
  0xdc   : > { %v591_v24 = vpack.c.bf16 %v590_v20, %v590_v20 }
  0xdd   : > { %v1344_v19 = vpop.f32.mrf.mxu1 }
  0xe1   : > { %v592_v21 = vld [vmem:[#allocation2] sm:$0xf] }
  0xe2   : > { %v609_v22 = vsel %vm604_vm3, %v592_v21, 0  ;;  %v1287_v23 = vcombine.low %v592_v21, %v592_v21 }
  0xe3   : > { %1346 = vmatpush3.bf16.xpose.msra.mxu0 %v609_v22 }
  0xe4   : > { %831 = vrot.lane.b32.xlu1 %v1287_v23, %s1486_s22  ;;  %717 = vrot.lane.b32.xlu0 %v1287_v23, %s1487_s23 }
  0xe5   : > { %1357 = vmatprep.subr.bf16.mxu0 %v1484_v1 }
  0xe8   : > { %829 = vrot.lane.b32.xlu1 %v591_v24, %s1486_s22  ;;  %712 = vrot.lane.b32.xlu0 %v591_v24, %s1487_s23 }
  0xea   : > { %1348 = vmatmul.mubr.msk.bf16.vlgmr.msra.gmra.mxu0 %vm604_vm3, %v591_v24 }
  0xeb   : > { %1359 = vmatprep.mubr.msk.bf16.mxu0 %vm1485_vm0, %v1484_v1 }
  0xec   : > { %940 = vrot.lane.b32.xlu1 %v591_v24, %s1488_s24  ;;  %942 = vrot.lane.b32.xlu0 %v1287_v23, %s1488_s24 }
 0x156   : > { %v718_v25 = vpop.permute.xlu0 %717  ;;  %v832_v27 = vpop.permute.xlu1 %831 }
 0x157   : > { %v723_v26 = vsel %vm604_vm3, %v718_v25, 0  ;;  %v837_v29 = vsel %vm604_vm3, %v832_v27, 0 }
 0x158   : > { %1358 = vmatpush3.bf16.xpose.msra.mxu0 %v723_v26 }
 0x159   : > { %1369 = vmatprep.subr.bf16.mxu0 %v1484_v1 }
 0x15a   : > { %v713_v28 = vpop.permute.xlu0 %712  ;;  %v830_v31 = vpop.permute.xlu1 %829 }
 0x15e   : > { %v943_v30 = vpop.permute.xlu0 %942  ;;  %v941_v33 = vpop.permute.xlu1 %940 }
 0x15f   : > { %1360 = vmatmul.mubr.msk.bf16.vlgmr.msra.gmra.mxu0 %vm604_vm3, %v713_v28  ;;  %v948_v32 = vsel %vm604_vm3, %v943_v30, 0 }
 0x160   : > { %1370 = vmatpush3.bf16.xpose.msra.mxu0 %v837_v29  ;;  %1371 = vmatprep.mubr.msk.bf16.mxu0 %vm1485_vm0, %v1484_v1 }
 0x161   : > { %1381 = vmatprep.subr.bf16.mxu0 %v1484_v1 }
 0x167   : > { %1372 = vmatmul.mubr.msk.bf16.vlgmr.msra.gmra.mxu0 %vm604_vm3, %v830_v31 }
 0x168   : > { %1382 = vmatpush3.bf16.xpose.msra.mxu0 %v948_v32  ;;  %1383 = vmatprep.mubr.msk.bf16.mxu0 %vm1485_vm0, %v1484_v1 }
 0x169   : > { %1393 = vmatprep.subr.bf16.mxu0 %v1484_v1 }
 0x16f   : > { %1384 = vmatmul.mubr.msk.bf16.vlgmr.msra.gmra.mxu0 %vm604_vm3, %v941_v33 }
 0x170   : > { %1397 = vmatprep.mubr.msk.bf16.mxu0 %vm1485_vm0, %v1484_v1 }
 0x1aa   : > { %v645_v37 = vpop.f32.mrf.mxu0 }
 0x1ab   : > { %v646_v38 = vadd.f32 %v645_v37, %v603_v36 }
 0x1ac   : > { %v1349_v39 = vpop.f32.mrf.mxu0 }
 0x1ad   : > { %v651_v40 = vsel %vm604_vm3, %v646_v38, -inf }
 0x1ae   : > { %652 = vmax.xlane.f32.xlu0 %v651_v40  ;;  %v648_v41 = vpop.f32.mrf.mxu0 }
 0x1b0   : > { %v1350_v42 = vpop.f32.mrf.mxu0 }
 0x21f   : > { %v759_v43 = vpop.f32.mrf.mxu0 }
 0x220   : > { %v760_v44 = vadd.f32 %v759_v43, %v603_v36 }
 0x221   : > { %v1361_v45 = vpop.f32.mrf.mxu0 }
 0x222   : > { %v765_v46 = vsel %vm604_vm3, %v760_v44, -inf }
 0x223   : > { %766 = vmax.xlane.f32.xlu1 %v765_v46  ;;  %v762_v47 = vpop.f32.mrf.mxu0 }
 0x225   : > { %v1362_v48 = vpop.f32.mrf.mxu0 }
 0x227   : > { %v873_v49 = vpop.f32.mrf.mxu0 }
 0x228   : > { %v874_v50 = vadd.f32 %v873_v49, %v603_v36  ;;  %v1440_v49 = vld [vmem:[%s1726_s7 + $0x8] sm:$0xff]  }
 0x229   : > { %v1373_v51 = vpop.f32.mrf.mxu0  ;;  %1394 = vmatpush3.bf16.msra.mxu0 %v1440_v49 }
 0x22a   : > { %v879_v52 = vsel %vm604_vm3, %v874_v50, -inf  ;;  %v1441_v51 = vld [vmem:[%s1726_s7] sm:$0xff]   ;;  %1395 = vmatprep.subr.bf16.mxu0 %v1484_v1 }
 0x22b   : > { %880 = vmax.xlane.f32.xlu0 %v879_v52  ;;  %v876_v53 = vpop.f32.mrf.mxu0 }
 0x22d   : > { %v1374_v54 = vpop.f32.mrf.mxu0  ;;  %1396 = vmatpush3.bf16.msra.mxu0 %v1441_v51 }
 0x22f   : > { %v984_v55 = vpop.f32.mrf.mxu0 }
 0x230   : > { %v985_v56 = vadd.f32 %v984_v55, %v603_v36 }
 0x231   : > { %v1385_v57 = vpop.f32.mrf.mxu0 }
 0x232   : > { %v990_v58 = vsel %vm604_vm3, %v985_v56, -inf }
 0x233   : > { %991 = vmax.xlane.f32.xlu0 %v990_v58  ;;  %v987_v59 = vpop.f32.mrf.mxu0 }
 0x234   : > { %512 = vrot.lane.b32.xlu1 %v1613_v11, %s1489_s12 }
 0x235   : > { %v1386_v60 = vpop.f32.mrf.mxu0 }
 0x237   : > { %v653_v61 = vpop.xlane.xlu0 %652 }
 0x238   : > { %v654_v62 = vsub.f32 %v646_v38, %v653_v61 }
 0x23a   : > { %v655_v63 = vmul.f32 1.442695, %v654_v62 }
 0x23c   : > { %1442 = vpow2.f32 %v655_v63 }
 0x249   : > { %v1443_v0 = vpop.eup %1442 }
 0x24a   : > { %v657_v2 = vsel %vm604_vm3, %v1443_v0, 0.0 }
 0x24b   : > { %658 = vadd.xlane.f32.xlu0 %v657_v2 }
 0x2ac   : > { %v767_v3 = vpop.xlane.xlu1 %766 }
 0x2ad   : > { %v768_v4 = vsub.f32 %v760_v44, %v767_v3 }
 0x2af   : > { %v769_v5 = vmul.f32 1.442695, %v768_v4 }
 0x2b0   : > { %v513_v7 = vpop.permute.xlu1 %512 }
 0x2b1   : > { %1444 = vpow2.f32 %v769_v5  ;;  %516 = vst.msk [vmem:[#allocation2 + $0x4] sm:$0xf] %vm507_vm2, %v513_v7 }
 0x2b4   : > { %v881_v8 = vpop.xlane.xlu0 %880 }
 0x2b5   : > { %v882_v9 = vsub.f32 %v874_v50, %v881_v8 }
 0x2b7   : > { %v883_v10 = vmul.f32 1.442695, %v882_v9 }
 0x2b8   : > { %v594_v11 = vld [vmem:[#allocation2 + $0x4] sm:$0xf] }
 0x2b9   : > { %1446 = vpow2.f32 %v883_v10  ;;  %v668_v12 = vsel %vm666_vm4, %v594_v11, 0  ;;  %v1289_v13 = vcombine.low %v594_v11, %v594_v11  ;;  %v1295_v10 = vld [vmem:[%s1727_s8] ss:$0 sm:$0xff]  ;;  %v1134_v11 = vunpack.c.l.bf16 %v1601_v6 }
 0x2ba   : > { %1352 = vmatpush3.bf16.msra.mxu1 %v668_v12 }
 0x2bb   : > { %780 = vrot.lane.b32.xlu1 %v1289_v13, %s1487_s23  ;;  %1363 = vmatprep.subr.bf16.mxu1 %v1484_v1  ;;  %s1492_s23 = smov 24  }
 0x2bc   : > { %v992_v14 = vpop.xlane.xlu0 %991 }
 0x2bd   : > { %v993_v15 = vsub.f32 %v985_v56, %v992_v14 }
 0x2be   : > { %v1445_v16 = vpop.eup %1444 }
 0x2bf   : > { %v994_v17 = vmul.f32 1.442695, %v993_v15  ;;  %1002 = vrot.lane.b32.xlu1 %v1289_v13, %s1488_s24  ;;  %v771_v18 = vsel %vm604_vm3, %v1445_v16, 0.0 }
 0x2c0   : > { %772 = vadd.xlane.f32.xlu0 %v771_v18 }
 0x2c1   : > { %1448 = vpow2.f32 %v994_v17 }
 0x2c6   : > { %v1447_v19 = vpop.eup %1446 }
 0x2c7   : > { %v885_v20 = vsel %vm604_vm3, %v1447_v19, 0.0 }
 0x2c8   : > { %886 = vadd.xlane.f32.xlu0 %v885_v20 }
 0x2ce   : > { %v1449_v21 = vpop.eup %1448 }
 0x2cf   : > { %v996_v22 = vsel %vm604_vm3, %v1449_v21, 0.0 }
 0x2d0   : > { %997 = vadd.xlane.f32.xlu0 %v996_v22 }
 0x2d4   : > { %v659_v23 = vpop.xlane.xlu0 %658 }
 0x2d5   : > { %1450 = vrcp.f32 %v659_v23 }
 0x2e2   : > { %v1451_v24 = vpop.eup %1450 }
 0x2e3   : > { %v661_v25 = vmul.f32 %v1451_v24, %v1443_v0 }
 0x2e5   : > { %v662_v26 = vpack.c.bf16 %v661_v25, %v661_v25 }
 0x2e6   : > { %891 = vrot.lane.b32.xlu0 %v1289_v13, %s1486_s22  ;;  %s1491_s22 = smov 16  }
 0x2e7   : > { %1354 = vmatmul.mubr.msk.bf16.vlgmr.msra.gmra.mxu1 %vm604_vm3, %v662_v26 }
 0x2e8   : > { %1365 = vmatprep.mubr.msk.bf16.mxu1 %vm1485_vm0, %v1484_v1 }
 0x32d   : > { %v781_v27 = vpop.permute.xlu1 %780 }
 0x32e   : > { %v786_v28 = vsel %vm666_vm4, %v781_v27, 0  ;;  %v1299_v27 = vld [vmem:[%s1728_s9] ss:$0 sm:$0xff] }
 0x32f   : > { %1364 = vmatpush3.bf16.msra.mxu1 %v786_v28 }
 0x330   : > { %1375 = vmatprep.subr.bf16.mxu1 %v1484_v1 }
 0x331   : > { %v1003_v39 = vpop.permute.xlu1 %1002 }
 0x332   : > { %v1008_v41 = vsel %vm666_vm4, %v1003_v39, 0 }
 0x349   : > { %v773_v29 = vpop.xlane.xlu0 %772 }
 0x34a   : > { %1452 = vrcp.f32 %v773_v29  ;;  %v1300_v29 = vld [vmem:[%s1729_s10] ss:$0 sm:$0xff] }
 0x351   : > { %v887_v30 = vpop.xlane.xlu0 %886 }
 0x352   : > { %1454 = vrcp.f32 %v887_v30 }
 0x357   : > { %v1453_v31 = vpop.eup %1452 }
 0x358   : > { %v775_v32 = vmul.f32 %v1453_v31, %v1445_v16 }
 0x359   : > { %v998_v33 = vpop.xlane.xlu0 %997 }
 0x35a   : > { %1456 = vrcp.f32 %v998_v33  ;;  %v776_v34 = vpack.c.bf16 %v775_v32, %v775_v32 }
 0x35c   : > { %1366 = vmatmul.mubr.msk.bf16.vlgmr.msra.gmra.mxu1 %vm604_vm3, %v776_v34 }
 0x35d   : > { %v892_v35 = vpop.permute.xlu0 %891  ;;  %1377 = vmatprep.mubr.msk.bf16.mxu1 %vm1485_vm0, %v1484_v1 }
 0x35e   : > { %v897_v36 = vsel %vm666_vm4, %v892_v35, 0 }
 0x35f   : > { %v1455_v37 = vpop.eup %1454  ;;  %1376 = vmatpush3.bf16.msra.mxu1 %v897_v36 }
 0x360   : > { %1387 = vmatprep.subr.bf16.mxu1 %v1484_v1  ;;  %v889_v38 = vmul.f32 %v1455_v37, %v1447_v19 }
 0x362   : > { %v890_v40 = vpack.c.bf16 %v889_v38, %v889_v38 }
 0x364   : > { %1378 = vmatmul.mubr.msk.bf16.vlgmr.msra.gmra.mxu1 %vm604_vm3, %v890_v40 }
 0x365   : > { %1388 = vmatpush3.bf16.msra.mxu1 %v1008_v41  ;;  %1389 = vmatprep.mubr.msk.bf16.mxu1 %vm1485_vm0, %v1484_v1 }
 0x367   : > { %v1457_v42 = vpop.eup %1456 }
 0x368   : > { %v1000_v43 = vmul.f32 %v1457_v42, %v1449_v21 }
 0x36a   : > { %v1001_v44 = vpack.c.bf16 %v1000_v43, %v1000_v43 }
 0x36c   : > { %1390 = vmatmul.mubr.msk.bf16.vlgmr.msra.gmra.mxu1 %vm604_vm3, %v1001_v44 }
 0x3a7   : > { %v704_v45 = vpop.f32.mrf.mxu1 }
 0x3a8   : > { %v710_v4 = vpack.c.bf16 %v704_v45, %v704_v45 }
 0x3a9   : > { %v1355_v46 = vpop.f32.mrf.mxu1 }
 0x3ab   : > { %v707_v47 = vpop.f32.mrf.mxu1 }
 0x3ad   : > { %v1356_v48 = vpop.f32.mrf.mxu1 }
 0x41c   : > { %v822_v50 = vpop.f32.mrf.mxu1 }
 0x41d   : > { %v828_v52 = vpack.c.bf16 %v822_v50, %v822_v50 }
 0x41e   : > { %v1367_v53 = vpop.f32.mrf.mxu1 }
 0x41f   : > { %1052 = vrot.lane.b32.xlu1 %v828_v52, %s1490_s21 }
 0x420   : > { %v825_v54 = vpop.f32.mrf.mxu1 }
 0x422   : > { %v1368_v55 = vpop.f32.mrf.mxu1 }
 0x424   : > { %v933_v56 = vpop.f32.mrf.mxu1 }
 0x425   : > { %v939_v57 = vpack.c.bf16 %v933_v56, %v933_v56 }
 0x426   : > { %v1379_v58 = vpop.f32.mrf.mxu1 }
 0x427   : > { %1055 = vrot.lane.b32.xlu1 %v939_v57, %s1491_s22 }
 0x428   : > { %v936_v59 = vpop.f32.mrf.mxu1 }
 0x42a   : > { %v1380_v60 = vpop.f32.mrf.mxu1 }
 0x42c   : > { %v1044_v61 = vpop.f32.mrf.mxu1 }
 0x42d   : > { %v1050_v62 = vpack.c.bf16 %v1044_v61, %v1044_v61 }
 0x42e   : > { %v1391_v63 = vpop.f32.mrf.mxu1 }
 0x42f   : > { %1058 = vrot.lane.b32.xlu1 %v1050_v62, %s1492_s23 }
 0x430   : > { %v1047_v0 = vpop.f32.mrf.mxu1 }
 0x432   : > { %v1392_v1 = vpop.f32.mrf.mxu1 }
 0x491   : > { %v1053_v2 = vpop.permute.xlu1 %1052 }
 0x492   : > { %v1062_v5 = vsel %vm604_vm3, %v710_v4, %v1053_v2 }
 0x499   : > { %v1056_v3 = vpop.permute.xlu1 %1055 }
 0x49a   : > { %v1065_v7 = vsel %vm1063_vm5, %v1062_v5, %v1056_v3 }
 0x4a1   : > { %v1059_v8 = vpop.permute.xlu1 %1058 }
 0x4a2   : > { %v1068_v9 = vsel %vm1066_vm6, %v1065_v7, %v1059_v8 }
 0x4a3   : > { %1398 = vmatmul.mubr.msk.bf16.vlgmr.msra.gmra.mxu0 %vm462_vm1, %v1068_v9 }
 0x563   : > { %v1128_v12 = vpop.f32.mrf.mxu0 }
 0x564   : > { %v1129_v13 = vadd.f32 %v1295_v10, %v1128_v12 }
 0x565   : > { %v1399_v14 = vpop.f32.mrf.mxu0 }
 0x566   : > { %v1135_v15 = vadd.f32 %v1134_v11, %v1129_v13 }
 0x567   : > { %v1131_v16 = vpop.f32.mrf.mxu0 }
 0x568   : > { %v1138_v17 = vsel %vm462_vm1, %v1135_v15, 0.0 }
 0x569   : > { %1139 = vadd.xlane.f32.xlu1 %v1138_v17  ;;  %v1400_v18 = vpop.f32.mrf.mxu0 }
 0x5f2   : > { %v1140_v19 = vpop.xlane.xlu1 %1139 }
 0x5f3   : > { %v1142_v20 = vmul.f32 0.03125, %v1140_v19 }
 0x5f5   : > { %v1143_v21 = vsub.f32 %v1135_v15, %v1142_v20 }
 0x5f7   : > { %v1144_v22 = vmul.f32 %v1143_v21, %v1143_v21 }
 0x5f9   : > { %v1145_v23 = vsel %vm462_vm1, %v1144_v22, 0.0 }
 0x5fa   : > { %1146 = vadd.xlane.f32.xlu0 %v1145_v23 }
 0x683   : > { %v1147_v24 = vpop.xlane.xlu0 %1146 }
 0x684   : > { %v1148_v25 = vmul.f32 0.03125, %v1147_v24 }
 0x686   : > { %v1149_v6 = vadd.f32 1e-05, %v1148_v25 }
 0x688   : > { %1458 = vrsqrt.f32 %v1149_v6 }
 0x695   : > { %v1459_v26 = vpop.eup %1458 }
 0x696   : > { %v1151_v28 = vmul.f32 %v1459_v26, %v1143_v21 }
 0x698   : > { %v1158_v30 = vmul.f32 %v1299_v27, %v1151_v28 }
 0x69a   : > { %v1165_v31 = vadd.f32 %v1300_v29, %v1158_v30 }
 0x69c   : > { %v1166_v32 = vpack.c.bf16 %v1165_v31, %v1165_v31 }
 0x69e   : > { %1168 = vst.msk [vmem:[%s432_s14] sm:$0xf] %vm507_vm2, %v1166_v32 }
 0x69f PF: > { %s21_s19 = sadd.s32 1, %s1482_s19   ;;  %s1731_s17 = smov %s1478_s18 }
 0x6a0   : > { %p18_p5 = scmp.ge.s32.totalorder %s21_s19, 4   ;;  %s1732_s18 = smov %s1734_s20 }
 0x6a2   :  { %20 = sbr.rel (!%p18_p5) target bundleno = 2 (0x2), region = 107 }

// kernel: transformer_decoder.7
= control target key start
LH: loop header
LB: loop body
LE: loop exit
PB: predicated region body
PF: predicated region fallthrough
CT: control target
= control target key end

     0   :  { %s1554_s17 = smov 0   ;;  %s1556_s18 = smov 0   ;;  %s1721_s0 = inlined_call_operand.vmem [shape: bf16[2,8,32], index: 0, kind: input, shape index: {}]   ;;  %s1722_s1 = inlined_call_operand.vmem [shape: bf16[2,8,32], index: 1, kind: input, shape index: {}]   ;;  %s1723_s2 = inlined_call_operand.vmem [shape: f32[2,1,8], index: 2, kind: input, shape index: {}]   ;;  %s1724_s3 = inlined_call_operand.vmem [shape: bf16[32,32], index: 3, kind: input, shape index: {}]   ;;  %s1725_s4 = inlined_call_operand.vmem [shape: f32[1,32], index: 4, kind: input, shape index: {}]   ;;  %s1726_s5 = inlined_call_operand.vmem [shape: bf16[32,64], index: 5, kind: input, shape index: {}]   ;;  %s1727_s6 = inlined_call_operand.vmem [shape: f32[1,64], index: 6, kind: input, shape index: {}]   ;;  %s1728_s7 = inlined_call_operand.vmem [shape: bf16[32,32], index: 7, kind: input, shape index: {}]   ;;  %s1729_s8 = inlined_call_operand.vmem [shape: f32[1,32], index: 8, kind: input, shape index: {}]   ;;  %s1730_s9 = inlined_call_operand.vmem [shape: f32[1,32], index: 9, kind: input, shape index: {}]   ;;  %s1731_s10 = inlined_call_operand.vmem [shape: f32[1,32], index: 10, kind: input, shape index: {}]   ;;  %s1732_s11 = inlined_call_operand.vmem [shape: bf16[2,8,32], index: 11, kind: output, shape index: {}]  }
   0x1   :  { %s1558_s19 = smov 0  }
   0x2 LB: > { %s33_s20 = sadd.s32 1, %s1479_s18  ;;  %p1272_p0 = scmp.ge.s32.totalorder %s1483_s19, 1  ;;  %s1483_s19 = sphi %s1558_s19, %s21_s19   ;;  %s1479_s18 = sphi %s1556_s18, %s1734_s18   ;;  %s1475_s17 = sphi %s1554_s17, %s1733_s17  }
   0x3   : > { %p35_p1 = scmp.ge.s32.totalorder %s33_s20, 2  ;;  %p372_p2 = scmp.lt.s32.totalorder %s1483_s19, 3 }
   0x5   : > { %s1736_s20 = smov (%p35_p1, %s33_s20), 0  ;;  %p373_p3 = pnand %p1272_p0, %p372_p2 }
   0x6   : > { %p423_p4 = scmp.lt.s32.totalorder (!%p373_p3), %s1475_s17, 1  ;;  %s1487_s25 = smov (!%p373_p3), 112  }
   0x7   : > { %376 = sbr.rel (%p373_p3) target bundleno = 1695 (0x69f), region = 64  ;;  %s1488_s26 = smov (!%p373_p3), 120  }
   0x8   : > { %s1489_s27 = smov (!%p373_p3), 104   ;;  %s1491_s21 = smov (!%p373_p3), 8  }
   0x9   : > { %s1492_s22 = smov (!%p373_p3), 16   ;;  %s1493_s23 = smov (!%p373_p3), 24  }
   0xc   : > { %v1435_v0 = vld [vmem:[%s1726_s5 + $0x8] sm:$0xff]   ;;  %v1485_v1 = vmov 0.0   ;;  %v1436_v2 = vld [vmem:[%s1726_s5] sm:$0xff]   ;;  %vm1486_vm0 = vmmov 0   ;;  %s1738_s17 = smov (!%p423_p4, %s1475_s17), 1  ;;  %vm473_vm1 = vcmask 261120  }
   0xd   : > { %1330 = vmatprep.subr.bf16.mxu0 %v1485_v1  ;;  %1338 = vmatprep.subr.bf16.mxu1 %v1485_v1  ;;  %v1437_v3 = vld [vmem:[%s1724_s3 + $0x8] sm:$0xff]   ;;  %v1438_v4 = vld [vmem:[%s1724_s3] sm:$0xff]   ;;  %s1594_s29 = sshll.u32 %s1738_s17, 2  ;;  %vm518_vm2 = vcmask 257024   ;;  %vm608_vm3 = vcmask 64512   ;;  %s436_s12 = scalar_lea.vmem %s1723_s2, %s1738_s17  ;;  %vm670_vm4 = vcmask 1043456  }
   0xe   : > { %1331 = vmatpush3.bf16.msra.mxu0 %v1435_v0  ;;  %1334 = vmatprep.mubr.msk.bf16.mxu0 %vm1486_vm0, %v1485_v1  ;;  %s433_s13 = scalar_lea.vmem %s1722_s1, %s1594_s29  ;;  %s429_s16 = scalar_lea.vmem %s1721_s0, %s1594_s29  ;;  %v1276_v7 = vld [vmem:[%s1727_s6] ss:$0 sm:$0xff]  ;;  %vm1067_vm5 = vcmask 130048   ;;  %vm1070_vm6 = vcmask 195584  }
   0xf   : > { %1332 = vmatprep.subr.bf16.mxu0 %v1485_v1  ;;  %1342 = vmatprep.mubr.msk.bf16.mxu1 %vm1486_vm0, %v1485_v1  ;;  %v449_v5 = vld [vmem:[%s433_s13] sm:$0xf]  ;;  %s1490_s17 = smov 96   ;;  %s443_s13 = scalar_lea.vmem %s1732_s11, %s1594_s29 }
  0x10   : > { %1339 = vmatpush3.bf16.msra.mxu1 %v1437_v3  ;;  %v1607_v6 = vld [vmem:[%s429_s16] sm:$0xf] }
  0x11   : > { %1340 = vmatprep.subr.bf16.mxu1 %v1485_v1  ;;  %v1281_v14 = vld [vmem:[%s1725_s4] ss:$0 sm:$0xff] }
  0x12   : > { %1333 = vmatpush3.bf16.msra.mxu0 %v1436_v2  ;;  %v1285_v34 = vld [vmem:[%s436_s12] ss:$0 sm:$0xff] }
  0x13   : > { %1346 = vmatprep.subr.bf16.mxu0 %v1485_v1 }
  0x14   : > { %1341 = vmatpush3.bf16.msra.mxu1 %v1438_v4 }
  0x15   : > { %1335 = vmatmul.mubr.msk.bf16.vlgmr.msra.gmra.mxu0 %vm473_vm1, %v449_v5  ;;  %1352 = vmatprep.subr.bf16.mxu1 %v1485_v1 }
  0x16   : > { %1348 = vmatprep.mubr.msk.bf16.mxu0 %vm1486_vm0, %v1485_v1 }
  0x17   : > { %1343 = vmatmul.mubr.msk.bf16.vlgmr.msra.gmra.mxu1 %vm473_vm1, %v1607_v6 }
  0x18   : > { %1354 = vmatprep.mubr.msk.bf16.mxu1 %vm1486_vm0, %v1485_v1 }
  0xd5   : > { %v511_v8 = vpop.f32.mrf.mxu0 }
  0xd6   : > { %v512_v9 = vadd.f32 %v1276_v7, %v511_v8 }
  0xd7   : > { %v1336_v10 = vpop.f32.mrf.mxu0  ;;  %v590_v12 = vpop.f32.mrf.mxu1 }
  0xd8   : > { %v1619_v11 = vpack.c.bf16 %v512_v9, %v512_v9  ;;  %v591_v17 = vadd.f32 %v1281_v14, %v590_v12 }
  0xd9   : > { %v514_v13 = vpop.f32.mrf.mxu0  ;;  %v1344_v15 = vpop.f32.mrf.mxu1 }
  0xda   : > { %519 = vst.msk [vmem:[#allocation2] sm:$0xf] %vm518_vm2, %v1619_v11  ;;  %v596_v20 = vmul.f32 0.35355338, %v591_v17 }
  0xdb   : > { %v1337_v16 = vpop.f32.mrf.mxu0  ;;  %v593_v18 = vpop.f32.mrf.mxu1 }
  0xdc   : > { %v597_v24 = vpack.c.bf16 %v596_v20, %v596_v20 }
  0xdd   : > { %v1345_v19 = vpop.f32.mrf.mxu1 }
  0xe1   : > { %v598_v21 = vld [vmem:[#allocation2] sm:$0xf] }
  0xe2   : > { %v613_v22 = vsel %vm608_vm3, %v598_v21, 0  ;;  %v1288_v23 = vcombine.low %v598_v21, %v598_v21 }
  0xe3   : > { %1347 = vmatpush3.bf16.xpose.msra.mxu0 %v613_v22 }
  0xe4   : > { %835 = vrot.lane.b32.xlu1 %v1288_v23, %s1487_s25  ;;  %721 = vrot.lane.b32.xlu0 %v1288_v23, %s1488_s26 }
  0xe5   : > { %1358 = vmatprep.subr.bf16.mxu0 %v1485_v1 }
  0xe8   : > { %833 = vrot.lane.b32.xlu1 %v597_v24, %s1487_s25  ;;  %716 = vrot.lane.b32.xlu0 %v597_v24, %s1488_s26 }
  0xea   : > { %1349 = vmatmul.mubr.msk.bf16.vlgmr.msra.gmra.mxu0 %vm608_vm3, %v597_v24 }
  0xeb   : > { %1360 = vmatprep.mubr.msk.bf16.mxu0 %vm1486_vm0, %v1485_v1 }
  0xec   : > { %944 = vrot.lane.b32.xlu1 %v597_v24, %s1489_s27  ;;  %946 = vrot.lane.b32.xlu0 %v1288_v23, %s1489_s27 }
 0x156   : > { %v722_v25 = vpop.permute.xlu0 %721  ;;  %v836_v27 = vpop.permute.xlu1 %835 }
 0x157   : > { %v727_v26 = vsel %vm608_vm3, %v722_v25, 0  ;;  %v841_v29 = vsel %vm608_vm3, %v836_v27, 0 }
 0x158   : > { %1359 = vmatpush3.bf16.xpose.msra.mxu0 %v727_v26 }
 0x159   : > { %1370 = vmatprep.subr.bf16.mxu0 %v1485_v1 }
 0x15a   : > { %v717_v28 = vpop.permute.xlu0 %716  ;;  %v834_v31 = vpop.permute.xlu1 %833 }
 0x15e   : > { %v947_v30 = vpop.permute.xlu0 %946  ;;  %v945_v33 = vpop.permute.xlu1 %944 }
 0x15f   : > { %1361 = vmatmul.mubr.msk.bf16.vlgmr.msra.gmra.mxu0 %vm608_vm3, %v717_v28  ;;  %v952_v32 = vsel %vm608_vm3, %v947_v30, 0 }
 0x160   : > { %1371 = vmatpush3.bf16.xpose.msra.mxu0 %v841_v29  ;;  %1372 = vmatprep.mubr.msk.bf16.mxu0 %vm1486_vm0, %v1485_v1 }
 0x161   : > { %1382 = vmatprep.subr.bf16.mxu0 %v1485_v1 }
 0x167   : > { %1373 = vmatmul.mubr.msk.bf16.vlgmr.msra.gmra.mxu0 %vm608_vm3, %v834_v31 }
 0x168   : > { %1383 = vmatpush3.bf16.xpose.msra.mxu0 %v952_v32  ;;  %1384 = vmatprep.mubr.msk.bf16.mxu0 %vm1486_vm0, %v1485_v1 }
 0x169   : > { %1394 = vmatprep.subr.bf16.mxu0 %v1485_v1 }
 0x16f   : > { %1385 = vmatmul.mubr.msk.bf16.vlgmr.msra.gmra.mxu0 %vm608_vm3, %v945_v33 }
 0x170   : > { %1398 = vmatprep.mubr.msk.bf16.mxu0 %vm1486_vm0, %v1485_v1 }
 0x1aa   : > { %v649_v35 = vpop.f32.mrf.mxu0 }
 0x1ab   : > { %v650_v36 = vadd.f32 %v1285_v34, %v649_v35 }
 0x1ac   : > { %v1350_v37 = vpop.f32.mrf.mxu0 }
 0x1ad   : > { %v655_v38 = vsel %vm608_vm3, %v650_v36, -inf }
 0x1ae   : > { %656 = vmax.xlane.f32.xlu0 %v655_v38  ;;  %v652_v39 = vpop.f32.mrf.mxu0 }
 0x1b0   : > { %v1351_v40 = vpop.f32.mrf.mxu0 }
 0x21f   : > { %v763_v41 = vpop.f32.mrf.mxu0 }
 0x220   : > { %v764_v42 = vadd.f32 %v1285_v34, %v763_v41 }
 0x221   : > { %v1362_v43 = vpop.f32.mrf.mxu0 }
 0x222   : > { %v769_v44 = vsel %vm608_vm3, %v764_v42, -inf }
 0x223   : > { %770 = vmax.xlane.f32.xlu1 %v769_v44  ;;  %v766_v45 = vpop.f32.mrf.mxu0 }
 0x225   : > { %v1363_v46 = vpop.f32.mrf.mxu0 }
 0x227   : > { %v877_v47 = vpop.f32.mrf.mxu0 }
 0x228   : > { %v878_v48 = vadd.f32 %v1285_v34, %v877_v47  ;;  %v1441_v47 = vld [vmem:[%s1728_s7 + $0x8] sm:$0xff]  }
 0x229   : > { %v1374_v49 = vpop.f32.mrf.mxu0  ;;  %1395 = vmatpush3.bf16.msra.mxu0 %v1441_v47 }
 0x22a   : > { %v883_v50 = vsel %vm608_vm3, %v878_v48, -inf  ;;  %v1442_v49 = vld [vmem:[%s1728_s7] sm:$0xff]   ;;  %1396 = vmatprep.subr.bf16.mxu0 %v1485_v1 }
 0x22b   : > { %884 = vmax.xlane.f32.xlu0 %v883_v50  ;;  %v880_v51 = vpop.f32.mrf.mxu0 }
 0x22d   : > { %v1375_v52 = vpop.f32.mrf.mxu0  ;;  %1397 = vmatpush3.bf16.msra.mxu0 %v1442_v49 }
 0x22f   : > { %v988_v53 = vpop.f32.mrf.mxu0 }
 0x230   : > { %v989_v54 = vadd.f32 %v1285_v34, %v988_v53 }
 0x231   : > { %v1386_v55 = vpop.f32.mrf.mxu0 }
 0x232   : > { %v994_v56 = vsel %vm608_vm3, %v989_v54, -inf }
 0x233   : > { %995 = vmax.xlane.f32.xlu0 %v994_v56  ;;  %v991_v57 = vpop.f32.mrf.mxu0 }
 0x234   : > { %523 = vrot.lane.b32.xlu1 %v1619_v11, %s1490_s17 }
 0x235   : > { %v1387_v58 = vpop.f32.mrf.mxu0 }
 0x237   : > { %v657_v59 = vpop.xlane.xlu0 %656 }
 0x238   : > { %v658_v60 = vsub.f32 %v650_v36, %v657_v59 }
 0x23a   : > { %v659_v61 = vmul.f32 1.442695, %v658_v60 }
 0x23c   : > { %1443 = vpow2.f32 %v659_v61 }
 0x249   : > { %v1444_v62 = vpop.eup %1443 }
 0x24a   : > { %v661_v63 = vsel %vm608_vm3, %v1444_v62, 0.0 }
 0x24b   : > { %662 = vadd.xlane.f32.xlu0 %v661_v63 }
 0x2ac   : > { %v771_v0 = vpop.xlane.xlu1 %770 }
 0x2ad   : > { %v772_v2 = vsub.f32 %v764_v42, %v771_v0 }
 0x2af   : > { %v773_v3 = vmul.f32 1.442695, %v772_v2 }
 0x2b0   : > { %v524_v4 = vpop.permute.xlu1 %523 }
 0x2b1   : > { %1445 = vpow2.f32 %v773_v3  ;;  %527 = vst.msk [vmem:[#allocation2 + $0x4] sm:$0xf] %vm518_vm2, %v524_v4 }
 0x2b4   : > { %v885_v5 = vpop.xlane.xlu0 %884 }
 0x2b5   : > { %v886_v7 = vsub.f32 %v878_v48, %v885_v5 }
 0x2b7   : > { %v887_v8 = vmul.f32 1.442695, %v886_v7 }
 0x2b8   : > { %v600_v9 = vld [vmem:[#allocation2 + $0x4] sm:$0xf] }
 0x2b9   : > { %1447 = vpow2.f32 %v887_v8  ;;  %v672_v10 = vsel %vm670_vm4, %v600_v9, 0  ;;  %v1290_v11 = vcombine.low %v600_v9, %v600_v9  ;;  %v1296_v8 = vld [vmem:[%s1729_s8] ss:$0 sm:$0xff]  ;;  %v1138_v9 = vunpack.c.l.bf16 %v1607_v6 }
 0x2ba   : > { %1353 = vmatpush3.bf16.msra.mxu1 %v672_v10 }
 0x2bb   : > { %784 = vrot.lane.b32.xlu1 %v1290_v11, %s1488_s26  ;;  %1364 = vmatprep.subr.bf16.mxu1 %v1485_v1 }
 0x2bc   : > { %v996_v12 = vpop.xlane.xlu0 %995 }
 0x2bd   : > { %v997_v13 = vsub.f32 %v989_v54, %v996_v12 }
 0x2be   : > { %v1446_v14 = vpop.eup %1445 }
 0x2bf   : > { %v998_v15 = vmul.f32 1.442695, %v997_v13  ;;  %1006 = vrot.lane.b32.xlu1 %v1290_v11, %s1489_s27  ;;  %v775_v16 = vsel %vm608_vm3, %v1446_v14, 0.0 }
 0x2c0   : > { %776 = vadd.xlane.f32.xlu0 %v775_v16 }
 0x2c1   : > { %1449 = vpow2.f32 %v998_v15 }
 0x2c6   : > { %v1448_v17 = vpop.eup %1447 }
 0x2c7   : > { %v889_v18 = vsel %vm608_vm3, %v1448_v17, 0.0 }
 0x2c8   : > { %890 = vadd.xlane.f32.xlu0 %v889_v18 }
 0x2ce   : > { %v1450_v19 = vpop.eup %1449 }
 0x2cf   : > { %v1000_v20 = vsel %vm608_vm3, %v1450_v19, 0.0 }
 0x2d0   : > { %1001 = vadd.xlane.f32.xlu0 %v1000_v20 }
 0x2d4   : > { %v663_v21 = vpop.xlane.xlu0 %662 }
 0x2d5   : > { %1451 = vrcp.f32 %v663_v21 }
 0x2e2   : > { %v1452_v22 = vpop.eup %1451 }
 0x2e3   : > { %v665_v23 = vmul.f32 %v1452_v22, %v1444_v62 }
 0x2e5   : > { %v666_v24 = vpack.c.bf16 %v665_v23, %v665_v23 }
 0x2e6   : > { %895 = vrot.lane.b32.xlu0 %v1290_v11, %s1487_s25 }
 0x2e7   : > { %1355 = vmatmul.mubr.msk.bf16.vlgmr.msra.gmra.mxu1 %vm608_vm3, %v666_v24 }
 0x2e8   : > { %1366 = vmatprep.mubr.msk.bf16.mxu1 %vm1486_vm0, %v1485_v1 }
 0x32d   : > { %v785_v25 = vpop.permute.xlu1 %784 }
 0x32e   : > { %v790_v26 = vsel %vm670_vm4, %v785_v25, 0  ;;  %v1300_v25 = vld [vmem:[%s1730_s9] ss:$0 sm:$0xff] }
 0x32f   : > { %1365 = vmatpush3.bf16.msra.mxu1 %v790_v26 }
 0x330   : > { %1376 = vmatprep.subr.bf16.mxu1 %v1485_v1 }
 0x331   : > { %v1007_v37 = vpop.permute.xlu1 %1006 }
 0x332   : > { %v1012_v39 = vsel %vm670_vm4, %v1007_v37, 0 }
 0x349   : > { %v777_v27 = vpop.xlane.xlu0 %776 }
 0x34a   : > { %1453 = vrcp.f32 %v777_v27  ;;  %v1301_v27 = vld [vmem:[%s1731_s10] ss:$0 sm:$0xff] }
 0x351   : > { %v891_v28 = vpop.xlane.xlu0 %890 }
 0x352   : > { %1455 = vrcp.f32 %v891_v28 }
 0x357   : > { %v1454_v29 = vpop.eup %1453 }
 0x358   : > { %v779_v30 = vmul.f32 %v1454_v29, %v1446_v14 }
 0x359   : > { %v1002_v31 = vpop.xlane.xlu0 %1001 }
 0x35a   : > { %1457 = vrcp.f32 %v1002_v31  ;;  %v780_v32 = vpack.c.bf16 %v779_v30, %v779_v30 }
 0x35c   : > { %1367 = vmatmul.mubr.msk.bf16.vlgmr.msra.gmra.mxu1 %vm608_vm3, %v780_v32 }
 0x35d   : > { %v896_v33 = vpop.permute.xlu0 %895  ;;  %1378 = vmatprep.mubr.msk.bf16.mxu1 %vm1486_vm0, %v1485_v1 }
 0x35e   : > { %v901_v34 = vsel %vm670_vm4, %v896_v33, 0 }
 0x35f   : > { %v1456_v35 = vpop.eup %1455  ;;  %1377 = vmatpush3.bf16.msra.mxu1 %v901_v34 }
 0x360   : > { %1388 = vmatprep.subr.bf16.mxu1 %v1485_v1  ;;  %v893_v36 = vmul.f32 %v1456_v35, %v1448_v17 }
 0x362   : > { %v894_v38 = vpack.c.bf16 %v893_v36, %v893_v36 }
 0x364   : > { %1379 = vmatmul.mubr.msk.bf16.vlgmr.msra.gmra.mxu1 %vm608_vm3, %v894_v38 }
 0x365   : > { %1389 = vmatpush3.bf16.msra.mxu1 %v1012_v39  ;;  %1390 = vmatprep.mubr.msk.bf16.mxu1 %vm1486_vm0, %v1485_v1 }
 0x367   : > { %v1458_v40 = vpop.eup %1457 }
 0x368   : > { %v1004_v41 = vmul.f32 %v1458_v40, %v1450_v19 }
 0x36a   : > { %v1005_v42 = vpack.c.bf16 %v1004_v41, %v1004_v41 }
 0x36c   : > { %1391 = vmatmul.mubr.msk.bf16.vlgmr.msra.gmra.mxu1 %vm608_vm3, %v1005_v42 }
 0x3a7   : > { %v708_v43 = vpop.f32.mrf.mxu1 }
 0x3a8   : > { %v714_v2 = vpack.c.bf16 %v708_v43, %v708_v43 }
 0x3a9   : > { %v1356_v44 = vpop.f32.mrf.mxu1 }
 0x3ab   : > { %v711_v45 = vpop.f32.mrf.mxu1 }
 0x3ad   : > { %v1357_v46 = vpop.f32.mrf.mxu1 }
 0x41c   : > { %v826_v48 = vpop.f32.mrf.mxu1 }
 0x41d   : > { %v832_v50 = vpack.c.bf16 %v826_v48, %v826_v48 }
 0x41e   : > { %v1368_v51 = vpop.f32.mrf.mxu1 }
 0x41f   : > { %1056 = vrot.lane.b32.xlu1 %v832_v50, %s1491_s21 }
 0x420   : > { %v829_v52 = vpop.f32.mrf.mxu1 }
 0x422   : > { %v1369_v53 = vpop.f32.mrf.mxu1 }
 0x424   : > { %v937_v54 = vpop.f32.mrf.mxu1 }
 0x425   : > { %v943_v55 = vpack.c.bf16 %v937_v54, %v937_v54 }
 0x426   : > { %v1380_v56 = vpop.f32.mrf.mxu1 }
 0x427   : > { %1059 = vrot.lane.b32.xlu1 %v943_v55, %s1492_s22 }
 0x428   : > { %v940_v57 = vpop.f32.mrf.mxu1 }
 0x42a   : > { %v1381_v58 = vpop.f32.mrf.mxu1 }
 0x42c   : > { %v1048_v59 = vpop.f32.mrf.mxu1 }
 0x42d   : > { %v1054_v60 = vpack.c.bf16 %v1048_v59, %v1048_v59 }
 0x42e   : > { %v1392_v61 = vpop.f32.mrf.mxu1 }
 0x42f   : > { %1062 = vrot.lane.b32.xlu1 %v1054_v60, %s1493_s23 }
 0x430   : > { %v1051_v62 = vpop.f32.mrf.mxu1 }
 0x432   : > { %v1393_v1 = vpop.f32.mrf.mxu1 }
 0x491   : > { %v1057_v63 = vpop.permute.xlu1 %1056 }
 0x492   : > { %v1066_v3 = vsel %vm608_vm3, %v714_v2, %v1057_v63 }
 0x499   : > { %v1060_v0 = vpop.permute.xlu1 %1059 }
 0x49a   : > { %v1069_v4 = vsel %vm1067_vm5, %v1066_v3, %v1060_v0 }
 0x4a1   : > { %v1063_v5 = vpop.permute.xlu1 %1062 }
 0x4a2   : > { %v1072_v7 = vsel %vm1070_vm6, %v1069_v4, %v1063_v5 }
 0x4a3   : > { %1399 = vmatmul.mubr.msk.bf16.vlgmr.msra.gmra.mxu0 %vm473_vm1, %v1072_v7 }
 0x563   : > { %v1132_v10 = vpop.f32.mrf.mxu0 }
 0x564   : > { %v1133_v11 = vadd.f32 %v1296_v8, %v1132_v10 }
 0x565   : > { %v1400_v12 = vpop.f32.mrf.mxu0 }
 0x566   : > { %v1139_v13 = vadd.f32 %v1138_v9, %v1133_v11 }
 0x567   : > { %v1135_v14 = vpop.f32.mrf.mxu0 }
 0x568   : > { %v1142_v15 = vsel %vm473_vm1, %v1139_v13, 0.0 }
 0x569   : > { %1143 = vadd.xlane.f32.xlu1 %v1142_v15  ;;  %v1401_v16 = vpop.f32.mrf.mxu0 }
 0x5f2   : > { %v1144_v17 = vpop.xlane.xlu1 %1143 }
 0x5f3   : > { %v1146_v18 = vmul.f32 0.03125, %v1144_v17 }
 0x5f5   : > { %v1147_v19 = vsub.f32 %v1139_v13, %v1146_v18 }
 0x5f7   : > { %v1148_v20 = vmul.f32 %v1147_v19, %v1147_v19 }
 0x5f9   : > { %v1149_v21 = vsel %vm473_vm1, %v1148_v20, 0.0 }
 0x5fa   : > { %1150 = vadd.xlane.f32.xlu0 %v1149_v21 }
 0x683   : > { %v1151_v22 = vpop.xlane.xlu0 %1150 }
 0x684   : > { %v1152_v23 = vmul.f32 0.03125, %v1151_v22 }
 0x686   : > { %v1153_v6 = vadd.f32 1e-05, %v1152_v23 }
 0x688   : > { %1459 = vrsqrt.f32 %v1153_v6 }
 0x695   : > { %v1460_v24 = vpop.eup %1459 }
 0x696   : > { %v1155_v26 = vmul.f32 %v1460_v24, %v1147_v19 }
 0x698   : > { %v1162_v28 = vmul.f32 %v1300_v25, %v1155_v26 }
 0x69a   : > { %v1169_v29 = vadd.f32 %v1301_v27, %v1162_v28 }
 0x69c   : > { %v1170_v30 = vpack.c.bf16 %v1169_v29, %v1169_v29 }
 0x69e   : > { %1172 = vst.msk [vmem:[%s443_s13] sm:$0xf] %vm518_vm2, %v1170_v30 }
 0x69f PF: > { %s21_s19 = sadd.s32 1, %s1483_s19   ;;  %s1733_s17 = smov %s1479_s18 }
 0x6a0   : > { %p18_p5 = scmp.ge.s32.totalorder %s21_s19, 4   ;;  %s1734_s18 = smov %s1736_s20 }
 0x6a2   :  { %20 = sbr.rel (!%p18_p5) target bundleno = 2 (0x2), region = 106 }

</bundles_post_ra>
